<compile_context>
chip_gen: v5e
topology: v5e:2x2
jax: 0.10.0
libtpu: 0.0.40
codegen_flags: <defaults>
</compile_context>

<pallas_src>
import numpy as np

import jax
import jax.numpy as jnp
from jax.experimental import pallas as pl
from jax.experimental.pallas import tpu as pltpu


# ----------------------------------------------------------------------------
# Fused kernel: conv1 -> conv2 -> fc1 -> fc2, B_TILE images per grid step.
# All weights are whole-array, VMEM-resident blocks; only x / logits move per
# step. bf16 operands, f32 accumulation.
# ----------------------------------------------------------------------------
def _policy_kernel(x_ref, w1_ref, b1_ref, w2_ref, b2_ref,
                   wf1_ref, bf1_ref, wf2_ref, bf2_ref, o_ref):
    # conv1 (dense matmul form) + ReLU
    x = x_ref[...].astype(jnp.bfloat16)                                  # (BT, 1024)
    h = jnp.dot(x, w1_ref[...], preferred_element_type=jnp.float32)      # (BT, 392)
    h = jnp.maximum(h + b1_ref[...], 0.0).astype(jnp.bfloat16)
    # conv2 (dense matmul form, columns already in PyTorch CHW flatten order) + ReLU
    h = jnp.dot(h, w2_ref[...], preferred_element_type=jnp.float32)      # (BT, 400)
    h = jnp.maximum(h + b2_ref[...], 0.0).astype(jnp.bfloat16)
    # fc1 + ReLU
    h = jnp.dot(h, wf1_ref[...], preferred_element_type=jnp.float32)     # (BT, 64)
    h = jnp.maximum(h + bf1_ref[...], 0.0).astype(jnp.bfloat16)
    # fc2 -> logits
    o_ref[...] = (jnp.dot(h, wf2_ref[...], preferred_element_type=jnp.float32)
                  + bf2_ref[...]).astype(o_ref.dtype)                    # (BT, n_acts)


# ----------------------------------------------------------------------------
# One-time prep: fold the two small convs into exact dense matrices.
# ----------------------------------------------------------------------------
def _conv1_dense(w, C, H, W, stride):
    """Dense matrix for conv1.

    Rows index the NCHW-flattened input image (c*H*W + y*W + x).
    Columns index conv1's output in HWC order ((oy*ow + ox)*c_out + oc).
    """
    c_out, c_in, kh, kw = w.shape
    oh = (H - kh) // stride + 1
    ow = (W - kw) // stride + 1
    M = np.zeros((c_in * H * W, oh * ow * c_out), np.float32)
    for ky in range(kh):
        for kx in range(kw):
            tap = np.asarray(w[:, :, ky, kx]).T                  # (c_in, c_out)
            for oy in range(oh):
                for ox in range(ow):
                    iy, ix = stride * oy + ky, stride * ox + kx
                    rows = np.arange(c_in) * (H * W) + iy * W + ix
                    cols = (oy * ow + ox) * c_out + np.arange(c_out)
                    M[np.ix_(rows, cols)] = tap
    return M, oh, ow


def _conv2_dense(w, ih, iw):
    """Dense matrix for conv2 (stride 1, VALID).

    Rows index conv1's output in HWC order ((iy*iw + ix)*c_in + ic).
    Columns index conv2's output in CHW (PyTorch flatten) order
    (oc*oh*ow + oy*ow + ox), so fc1 weights apply directly.
    """
    c_out, c_in, kh, kw = w.shape
    oh, ow = ih - kh + 1, iw - kw + 1
    M = np.zeros((ih * iw * c_in, c_out * oh * ow), np.float32)
    for ky in range(kh):
        for kx in range(kw):
            tap = np.asarray(w[:, :, ky, kx]).T                  # (c_in, c_out)
            for oy in range(oh):
                for ox in range(ow):
                    iy, ix = oy + ky, ox + kx
                    rows = (iy * iw + ix) * c_in + np.arange(c_in)
                    cols = np.arange(c_out) * (oh * ow) + oy * ow + ox
                    M[np.ix_(rows, cols)] = tap
    return M, oh, ow


# ----------------------------------------------------------------------------
# Parameter prep + jitted forward builder.
# ----------------------------------------------------------------------------
def build_policy_forward(params, obs_dim, b_tile_max=256):
    C, H, W = obs_dim
    w1 = np.asarray(params["conv1_w"], np.float32)               # (8, C, 4, 4)
    w2 = np.asarray(params["conv2_w"], np.float32)               # (16, 8, 3, 3)
    stride1 = 2

    W1d, oh1, ow1 = _conv1_dense(w1, C, H, W, stride1)           # (1024, 392)
    W2d, oh2, ow2 = _conv2_dense(w2, oh1, ow1)                   # (392, 400)

    c1_out, c2_out = w1.shape[0], w2.shape[0]
    d_in = C * H * W                                             # 1024
    d1 = oh1 * ow1 * c1_out                                      # 392
    d2 = c2_out * oh2 * ow2                                      # 400
    hidden = params["fc1_w"].shape[1]                            # 64
    n_acts = params["fc2_w"].shape[1]
    assert params["fc1_w"].shape[0] == d2

    # Dense bias vectors matching the dense-matrix column orders above.
    b1d = np.tile(np.asarray(params["conv1_b"], np.float32), oh1 * ow1)      # (392,)
    b2d = np.repeat(np.asarray(params["conv2_b"], np.float32), oh2 * ow2)    # (400,)

    kp = dict(
        w1=jnp.asarray(W1d, jnp.bfloat16),
        b1=jnp.asarray(b1d, jnp.float32).reshape(1, d1),
        w2=jnp.asarray(W2d, jnp.bfloat16),
        b2=jnp.asarray(b2d, jnp.float32).reshape(1, d2),
        wf1=jnp.asarray(params["fc1_w"], jnp.bfloat16),           # (400, 64), (in,out)
        bf1=jnp.asarray(params["fc1_b"], jnp.float32).reshape(1, hidden),
        wf2=jnp.asarray(params["fc2_w"], jnp.bfloat16),           # (64, n_acts)
        bf2=jnp.asarray(params["fc2_b"], jnp.float32).reshape(1, n_acts),
    )
    weight_args = (kp["w1"], kp["b1"], kp["w2"], kp["b2"],
                   kp["wf1"], kp["bf1"], kp["wf2"], kp["bf2"])
    weight_specs = [pl.BlockSpec(a.shape, lambda i: (0, 0)) for a in weight_args]

    def forward(x):
        B = x.shape[0]
        if B <= b_tile_max:
            bt = ((B + 7) // 8) * 8          # single grid step, sublane-aligned
        else:
            bt = b_tile_max
        Bp = ((B + bt - 1) // bt) * bt

        xf = x.reshape(B, d_in)              # NCHW flatten, contiguous (free)
        if Bp != B:
            xf = jnp.pad(xf, ((0, Bp - B), (0, 0)))

        out = pl.pallas_call(
            _policy_kernel,
            grid=(Bp // bt,),
            out_shape=jax.ShapeDtypeStruct((Bp, n_acts), jnp.float32),
            in_specs=[pl.BlockSpec((bt, d_in), lambda i: (i, 0))] + weight_specs,
            out_specs=pl.BlockSpec((bt, n_acts), lambda i: (i, 0)),
            compiler_params=pltpu.CompilerParams(
                dimension_semantics=("parallel",)),
        )(xf, *weight_args)
        return out[:B]

    return jax.jit(forward)


# ----------------------------------------------------------------------------
# Parameters + pure-JAX reference (same math, XLA convs) for a sanity check.
# ----------------------------------------------------------------------------
def init_params(key, n_channels=4, n_acts=6):
    ks = jax.random.split(key, 8)
    scale = 0.1
    enc_out = 16 * 5 * 5     # conv1 -> 7x7, conv2 -> 5x5, 16 channels
    hidden = 64              # GRIDWORLD_HIDDEN_SIZE
    return {
        "conv1_w": scale * jax.random.normal(ks[0], (8, n_channels, 4, 4), jnp.float32),
        "conv1_b": scale * jax.random.normal(ks[1], (8,), jnp.float32),
        "conv2_w": scale * jax.random.normal(ks[2], (16, 8, 3, 3), jnp.float32),
        "conv2_b": scale * jax.random.normal(ks[3], (16,), jnp.float32),
        "fc1_w": scale * jax.random.normal(ks[4], (enc_out, hidden), jnp.float32),
        "fc1_b": scale * jax.random.normal(ks[5], (hidden,), jnp.float32),
        "fc2_w": scale * jax.random.normal(ks[6], (hidden, n_acts), jnp.float32),
        "fc2_b": scale * jax.random.normal(ks[7], (n_acts,), jnp.float32),
    }


def _reference_forward(x, p):
    dn = jax.lax.conv_dimension_numbers(x.shape, p["conv1_w"].shape,
                                        ("NCHW", "OIHW", "NCHW"))
    h = jax.lax.conv_general_dilated(x, p["conv1_w"], (2, 2), "VALID",
                                     dimension_numbers=dn)
    h = jnp.maximum(h + p["conv1_b"][None, :, None, None], 0.0)
    dn2 = jax.lax.conv_dimension_numbers(h.shape, p["conv2_w"].shape,
                                         ("NCHW", "OIHW", "NCHW"))
    h = jax.lax.conv_general_dilated(h, p["conv2_w"], (1, 1), "VALID",
                                     dimension_numbers=dn2)
    h = jnp.maximum(h + p["conv2_b"][None, :, None, None], 0.0)
    h = h.reshape(h.shape[0], -1)
    h = jnp.maximum(h @ p["fc1_w"] + p["fc1_b"], 0.0)
    return h @ p["fc2_w"] + p["fc2_b"]


if __name__ == "__main__":
    key = jax.random.PRNGKey(0)
    k_x, k_p = jax.random.split(key)

    B, C, H, W = 2, 4, 16, 16
    n_acts = 6
    x = jax.random.normal(k_x, (B, C, H, W), jnp.float32)
    params = init_params(k_p, n_channels=C, n_acts=n_acts)

    forward = build_policy_forward(params, (C, H, W))
    logits = jax.block_until_ready(forward(x))
    assert logits.shape == (B, n_acts), logits.shape

    ref = _reference_forward(x, params)
    assert jnp.allclose(logits, ref, rtol=2e-2, atol=2e-2), "mismatch vs reference"

    # Also exercise the multi-grid-step (batch-tiled + padded) path.
    B2 = 24
    x2 = jax.random.normal(jax.random.PRNGKey(1), (B2, C, H, W), jnp.float32)
    forward_tiled = build_policy_forward(params, (C, H, W), b_tile_max=8)
    logits2 = jax.block_until_ready(forward_tiled(x2))
    ref2 = _reference_forward(x2, params)
    assert logits2.shape == (B2, n_acts), logits2.shape
    assert jnp.allclose(logits2, ref2, rtol=2e-2, atol=2e-2), "mismatch (tiled path)"

    print("KERNEL_OK")
</pallas_src>

<mosaic_0001>
module attributes {stable_mosaic.version = 11 : i64} {
  func.func @_policy_kernel(%arg0: i32, %arg1: memref<8x1024xf32, #tpu.memory_space<vmem>>, %arg2: memref<1024x392xbf16, #tpu.memory_space<vmem>>, %arg3: memref<1x392xf32, #tpu.memory_space<vmem>>, %arg4: memref<392x400xbf16, #tpu.memory_space<vmem>>, %arg5: memref<1x400xf32, #tpu.memory_space<vmem>>, %arg6: memref<400x64xbf16, #tpu.memory_space<vmem>>, %arg7: memref<1x64xf32, #tpu.memory_space<vmem>>, %arg8: memref<64x6xbf16, #tpu.memory_space<vmem>>, %arg9: memref<1x6xf32, #tpu.memory_space<vmem>>, %arg10: memref<8x6xf32, #tpu.memory_space<vmem>>) attributes {dimension_semantics = [#tpu.dimension_semantics<parallel>], iteration_bounds = array<i64: 1>, scalar_prefetch = 0 : i64, scratch_operands = 0 : i64, tpu.core_type = #tpu.core_type<tc>, window_params = [{transform_indices = @transform_0, window_bounds = array<i64: 8, 1024>}, {pipeline_mode = #tpu.pipeline_mode<synchronous>, transform_indices = @transform_1, window_bounds = array<i64: 1024, 392>}, {pipeline_mode = #tpu.pipeline_mode<synchronous>, transform_indices = @transform_2, window_bounds = array<i64: 1, 392>}, {pipeline_mode = #tpu.pipeline_mode<synchronous>, transform_indices = @transform_3, window_bounds = array<i64: 392, 400>}, {pipeline_mode = #tpu.pipeline_mode<synchronous>, transform_indices = @transform_4, window_bounds = array<i64: 1, 400>}, {pipeline_mode = #tpu.pipeline_mode<synchronous>, transform_indices = @transform_5, window_bounds = array<i64: 400, 64>}, {pipeline_mode = #tpu.pipeline_mode<synchronous>, transform_indices = @transform_6, window_bounds = array<i64: 1, 64>}, {pipeline_mode = #tpu.pipeline_mode<synchronous>, transform_indices = @transform_7, window_bounds = array<i64: 64, 6>}, {pipeline_mode = #tpu.pipeline_mode<synchronous>, transform_indices = @transform_8, window_bounds = array<i64: 1, 6>}, {transform_indices = @transform_9, window_bounds = array<i64: 8, 6>}]} {
    %c0 = arith.constant 0 : index
    %c0_0 = arith.constant 0 : index
    %0 = vector.load %arg1[%c0, %c0_0] : memref<8x1024xf32, #tpu.memory_space<vmem>>, vector<8x1024xf32>
    %1 = arith.truncf %0 : vector<8x1024xf32> to vector<8x1024xbf16>
    %c0_1 = arith.constant 0 : index
    %c0_2 = arith.constant 0 : index
    %2 = vector.load %arg2[%c0_1, %c0_2] : memref<1024x392xbf16, #tpu.memory_space<vmem>>, vector<1024x392xbf16>
    %cst = arith.constant dense<0.000000e+00> : vector<8x392xf32>
    %3 = tpu.matmul %1, %2, %cst {dimension_numbers = #tpu.dot_dimension_numbers<[1], [0], [0], [1], [0, 0, 1, 1], [], []>} : vector<8x1024xbf16>, vector<1024x392xbf16>, vector<8x392xf32> -> vector<8x392xf32>
    %c0_3 = arith.constant 0 : index
    %c0_4 = arith.constant 0 : index
    %4 = vector.load %arg3[%c0_3, %c0_4] : memref<1x392xf32, #tpu.memory_space<vmem>>, vector<1x392xf32>
    %5 = vector.broadcast %4 : vector<1x392xf32> to vector<8x392xf32>
    %6 = arith.addf %3, %5 : vector<8x392xf32>
    %cst_5 = arith.constant 0.000000e+00 : f32
    %7 = vector.broadcast %cst_5 : f32 to vector<8x392xf32>
    %8 = arith.maximumf %6, %7 : vector<8x392xf32>
    %9 = arith.truncf %8 : vector<8x392xf32> to vector<8x392xbf16>
    %c0_6 = arith.constant 0 : index
    %c0_7 = arith.constant 0 : index
    %10 = vector.load %arg4[%c0_6, %c0_7] : memref<392x400xbf16, #tpu.memory_space<vmem>>, vector<392x400xbf16>
    %cst_8 = arith.constant dense<0.000000e+00> : vector<8x400xf32>
    %11 = tpu.matmul %9, %10, %cst_8 {dimension_numbers = #tpu.dot_dimension_numbers<[1], [0], [0], [1], [0, 0, 1, 1], [], []>} : vector<8x392xbf16>, vector<392x400xbf16>, vector<8x400xf32> -> vector<8x400xf32>
    %c0_9 = arith.constant 0 : index
    %c0_10 = arith.constant 0 : index
    %12 = vector.load %arg5[%c0_9, %c0_10] : memref<1x400xf32, #tpu.memory_space<vmem>>, vector<1x400xf32>
    %13 = vector.broadcast %12 : vector<1x400xf32> to vector<8x400xf32>
    %14 = arith.addf %11, %13 : vector<8x400xf32>
    %cst_11 = arith.constant 0.000000e+00 : f32
    %15 = vector.broadcast %cst_11 : f32 to vector<8x400xf32>
    %16 = arith.maximumf %14, %15 : vector<8x400xf32>
    %17 = arith.truncf %16 : vector<8x400xf32> to vector<8x400xbf16>
    %c0_12 = arith.constant 0 : index
    %c0_13 = arith.constant 0 : index
    %18 = vector.load %arg6[%c0_12, %c0_13] : memref<400x64xbf16, #tpu.memory_space<vmem>>, vector<400x64xbf16>
    %cst_14 = arith.constant dense<0.000000e+00> : vector<8x64xf32>
    %19 = tpu.matmul %17, %18, %cst_14 {dimension_numbers = #tpu.dot_dimension_numbers<[1], [0], [0], [1], [0, 0, 1, 1], [], []>} : vector<8x400xbf16>, vector<400x64xbf16>, vector<8x64xf32> -> vector<8x64xf32>
    %c0_15 = arith.constant 0 : index
    %c0_16 = arith.constant 0 : index
    %20 = vector.load %arg7[%c0_15, %c0_16] : memref<1x64xf32, #tpu.memory_space<vmem>>, vector<1x64xf32>
    %21 = vector.broadcast %20 : vector<1x64xf32> to vector<8x64xf32>
    %22 = arith.addf %19, %21 : vector<8x64xf32>
    %cst_17 = arith.constant 0.000000e+00 : f32
    %23 = vector.broadcast %cst_17 : f32 to vector<8x64xf32>
    %24 = arith.maximumf %22, %23 : vector<8x64xf32>
    %25 = arith.truncf %24 : vector<8x64xf32> to vector<8x64xbf16>
    %c0_18 = arith.constant 0 : index
    %c0_19 = arith.constant 0 : index
    %26 = vector.load %arg8[%c0_18, %c0_19] : memref<64x6xbf16, #tpu.memory_space<vmem>>, vector<64x6xbf16>
    %cst_20 = arith.constant dense<0.000000e+00> : vector<8x6xf32>
    %27 = tpu.matmul %25, %26, %cst_20 {dimension_numbers = #tpu.dot_dimension_numbers<[1], [0], [0], [1], [0, 0, 1, 1], [], []>} : vector<8x64xbf16>, vector<64x6xbf16>, vector<8x6xf32> -> vector<8x6xf32>
    %c0_21 = arith.constant 0 : index
    %c0_22 = arith.constant 0 : index
    %28 = vector.load %arg9[%c0_21, %c0_22] : memref<1x6xf32, #tpu.memory_space<vmem>>, vector<1x6xf32>
    %29 = vector.broadcast %28 : vector<1x6xf32> to vector<8x6xf32>
    %30 = arith.addf %27, %29 : vector<8x6xf32>
    %c0_23 = arith.constant 0 : index
    %c0_24 = arith.constant 0 : index
    %31 = vector.load %arg10[%c0_23, %c0_24] : memref<8x6xf32, #tpu.memory_space<vmem>>, vector<8x6xf32>
    tpu.vector_store %arg10[%c0_23, %c0_24], %30 {strides = array<i32>} : memref<8x6xf32, #tpu.memory_space<vmem>>, vector<8x6xf32>,
    return
  }
  func.func @transform_0(%arg0: i32) -> (i32, i32) {
    %c0_i32 = arith.constant 0 : i32
    %c0_i32_0 = arith.constant 0 : i32
    return %arg0, %c0_i32 : i32, i32
  }
  func.func @transform_1(%arg0: i32) -> (i32, i32) {
    %c0_i32 = arith.constant 0 : i32
    %c0_i32_0 = arith.constant 0 : i32
    %c0_i32_1 = arith.constant 0 : i32
    return %c0_i32, %c0_i32_0 : i32, i32
  }
  func.func @transform_2(%arg0: i32) -> (i32, i32) {
    %c0_i32 = arith.constant 0 : i32
    %c0_i32_0 = arith.constant 0 : i32
    %c0_i32_1 = arith.constant 0 : i32
    return %c0_i32, %c0_i32_0 : i32, i32
  }
  func.func @transform_3(%arg0: i32) -> (i32, i32) {
    %c0_i32 = arith.constant 0 : i32
    %c0_i32_0 = arith.constant 0 : i32
    %c0_i32_1 = arith.constant 0 : i32
    return %c0_i32, %c0_i32_0 : i32, i32
  }
  func.func @transform_4(%arg0: i32) -> (i32, i32) {
    %c0_i32 = arith.constant 0 : i32
    %c0_i32_0 = arith.constant 0 : i32
    %c0_i32_1 = arith.constant 0 : i32
    return %c0_i32, %c0_i32_0 : i32, i32
  }
  func.func @transform_5(%arg0: i32) -> (i32, i32) {
    %c0_i32 = arith.constant 0 : i32
    %c0_i32_0 = arith.constant 0 : i32
    %c0_i32_1 = arith.constant 0 : i32
    return %c0_i32, %c0_i32_0 : i32, i32
  }
  func.func @transform_6(%arg0: i32) -> (i32, i32) {
    %c0_i32 = arith.constant 0 : i32
    %c0_i32_0 = arith.constant 0 : i32
    %c0_i32_1 = arith.constant 0 : i32
    return %c0_i32, %c0_i32_0 : i32, i32
  }
  func.func @transform_7(%arg0: i32) -> (i32, i32) {
    %c0_i32 = arith.constant 0 : i32
    %c0_i32_0 = arith.constant 0 : i32
    %c0_i32_1 = arith.constant 0 : i32
    return %c0_i32, %c0_i32_0 : i32, i32
  }
  func.func @transform_8(%arg0: i32) -> (i32, i32) {
    %c0_i32 = arith.constant 0 : i32
    %c0_i32_0 = arith.constant 0 : i32
    %c0_i32_1 = arith.constant 0 : i32
    return %c0_i32, %c0_i32_0 : i32, i32
  }
  func.func @transform_9(%arg0: i32) -> (i32, i32) {
    %c0_i32 = arith.constant 0 : i32
    %c0_i32_0 = arith.constant 0 : i32
    return %arg0, %c0_i32 : i32, i32
  }
}

</mosaic_0001>

<bundles_post_ra>
// kernel: forward.1
= control target key start
LH: loop header
LB: loop body
LE: loop exit
PB: predicated region body
PF: predicated region fallthrough
CT: control target
= control target key end

     0   :  { %14 = vsyncpa [#allocation3], 0  ;;  %s5518_s0 = inlined_call_operand.vmem [shape: f32[8,1024], index: 0, kind: input, shape index: {}]   ;;  %s5519_s1 = inlined_call_operand.hbm [shape: bf16[1024,392], index: 1, kind: input, shape index: {}]   ;;  %s5520_s2 = inlined_call_operand.vmem [shape: f32[1,392], index: 2, kind: input, shape index: {}]   ;;  %s5521_s3 = inlined_call_operand.hbm [shape: bf16[392,400], index: 3, kind: input, shape index: {}]   ;;  %s5522_s4 = inlined_call_operand.vmem [shape: f32[1,400], index: 4, kind: input, shape index: {}]   ;;  %s5523_s5 = inlined_call_operand.vmem [shape: bf16[400,64], index: 5, kind: input, shape index: {}]   ;;  %s5524_s6 = inlined_call_operand.vmem [shape: f32[1,64], index: 6, kind: input, shape index: {}]   ;;  %s5525_s7 = inlined_call_operand.hbm [shape: bf16[64,6], index: 7, kind: input, shape index: {}]   ;;  %s5526_s8 = inlined_call_operand.vmem [shape: f32[1,6], index: 8, kind: input, shape index: {}]   ;;  %s5527_s9 = inlined_call_operand.vmem [shape: f32[8,6], index: 9, kind: output, shape index: {}]  }
   0x1   :  { %15 = vsyncpa [#allocation5], 0  ;;  %s37_s11 = sshll.u32 %s5521_s3, 4  ;;  %s5217_s12 = smov [#allocation4]   ;;  %s38_s11 = int_to_ptr.hbm [resolvable:$true] %s37_s11 }
   0x2   :  { %s39_s13 = sshll.u32 %s5217_s12, 4  ;;  %s22_s16 = sshll.u32 %s5519_s1, 4  ;;  %s40_s13 = int_to_ptr.vmem [resolvable:$true] %s39_s13  ;;  %s23_s16 = int_to_ptr.hbm [resolvable:$true] %s22_s16 }
   0x3   :  { %s5218_s17 = smov 256   ;;  %s5219_s18 = smov 16  }
   0x4   :  { %45 = dma.hbm_to_vmem [thread:$0]  %s38_s11, 12544, %s40_s13, [#allocation5], %s5218_s17, %s5218_s17, %s5219_s18  }
   0x5   :  { %s5220_s19 = smov [#allocation2]   ;;  %s56_s23 = sshll.u32 %s5525_s7, 4  ;;  %s57_s23 = int_to_ptr.hbm [resolvable:$true] %s56_s23 }
   0x6   :  { %s24_s20 = sshll.u32 %s5220_s19, 4  ;;  %s5221_s3 = smov [#allocation6]   ;;  %s25_s20 = int_to_ptr.vmem [resolvable:$true] %s24_s20 }
   0x7   :  { %30 = dma.hbm_to_vmem [thread:$0]  %s23_s16, 32768, %s25_s20, [#allocation3], %s5218_s17, %s5218_s17, %s5219_s18  }
   0x8   :  { %s58_s24 = sshll.u32 %s5221_s3, 4  ;;  %s5222_s25 = smov 64   ;;  %s59_s24 = int_to_ptr.vmem [resolvable:$true] %s58_s24 }
   0x9   :  { %s5223_s26 = smov 4  }
   0xa   :  { %64 = dma.hbm_to_vmem [thread:$0]  %s57_s23, 512, %s59_s24, [#allocation5], %s5222_s25, %s5222_s25, %s5223_s26  }
   0xb   :  { %5213 = dma.done.wait [#allocation3], 32768  }
   0xc   :  { %5214 = vsyncadd [#allocation3], 4294934528 }
   0xd   :  { %5215 = dma.done.wait [#allocation5], 13056  }
   0xe   :  { %5216 = vsyncadd [#allocation5], 4294954240  ;;  %v3334_v0 = vld [vmem:[#allocation2 + $0xe0] sm:$0xf]  ;;  %v4780_v1 = vld [vmem:[#allocation2 + $0xec] sm:$0xf0] }
   0xf   :  { %v3462_v2 = vld [vmem:[#allocation2 + $0x1e0] sm:$0xf]  ;;  %v3335_v3 = vor.u32 %v4780_v1, %v3334_v0  ;;  %v4812_v4 = vld [vmem:[#allocation2 + $0x1ec] sm:$0xf0]  ;;  %vm2668_vm0 = vcmask 1043456   ;;  %vm2664_vm1 = vcmask 64512  }
  0x10   :  { %v3590_v5 = vld [vmem:[#allocation2 + $0x2e0] sm:$0xf]  ;;  %v4844_v6 = vld [vmem:[#allocation2 + $0x2ec] sm:$0xf0]  ;;  %v3463_v7 = vor.u32 %v4812_v4, %v3462_v2  ;;  %vm3101_vm2 = vcmask 130048   ;;  %vm3195_vm3 = vcmask 523264  }
  0x11   :  { %v3591_v8 = vor.u32 %v4844_v6, %v3590_v5  ;;  %v3718_v9 = vld [vmem:[#allocation2 + $0x3e0] sm:$0xf]  ;;  %v4876_v10 = vld [vmem:[#allocation2 + $0x3ec] sm:$0xf0]  ;;  %1642 = vmatpush.bf16.msra.mxu0 %v3335_v3  ;;  %vm3212_vm4 = vcmask 48128  }
  0x12   :  { %v3318_v11 = vld [vmem:[#allocation2 + $0xc0] sm:$0xf]  ;;  %v3719_v12 = vor.u32 %v4876_v10, %v3718_v9  ;;  %v4776_v13 = vld [vmem:[#allocation2 + $0xcc] sm:$0xf0]  ;;  %1655 = vmatpush.bf16.msra.mxu1 %v3463_v7 }
  0x13   :  { %v3446_v14 = vld [vmem:[#allocation2 + $0x1c0] sm:$0xf]  ;;  %v4808_v15 = vld [vmem:[#allocation2 + $0x1cc] sm:$0xf0]  ;;  %1668 = vmatpush.bf16.msra.mxu2 %v3591_v8  ;;  %v3319_v16 = vor.u32 %v4776_v13, %v3318_v11 }
  0x14   :  { %v3447_v17 = vor.u32 %v4808_v15, %v3446_v14  ;;  %v3574_v18 = vld [vmem:[#allocation2 + $0x2c0] sm:$0xf]  ;;  %v4840_v19 = vld [vmem:[#allocation2 + $0x2cc] sm:$0xf0]  ;;  %1681 = vmatpush.bf16.msra.mxu3 %v3719_v12 }
  0x15   :  { %v3702_v20 = vld [vmem:[#allocation2 + $0x3c0] sm:$0xf]  ;;  %v3575_v21 = vor.u32 %v4840_v19, %v3574_v18  ;;  %v4872_v22 = vld [vmem:[#allocation2 + $0x3cc] sm:$0xf0]  ;;  %1643 = vmatpush.bf16.msra.mxu0 %v3319_v16 }
  0x16   :  { %v3302_v23 = vld [vmem:[#allocation2 + $0xa0] sm:$0xf]  ;;  %v4772_v24 = vld [vmem:[#allocation2 + $0xac] sm:$0xf0]  ;;  %v3703_v25 = vor.u32 %v4872_v22, %v3702_v20  ;;  %1656 = vmatpush.bf16.msra.mxu1 %v3447_v17 }
  0x17   :  { %v3430_v26 = vld [vmem:[#allocation2 + $0x1a0] sm:$0xf]  ;;  %v4804_v27 = vld [vmem:[#allocation2 + $0x1ac] sm:$0xf0]  ;;  %v3303_v29 = vor.u32 %v4772_v24, %v3302_v23  ;;  %1669 = vmatpush.bf16.msra.mxu2 %v3575_v21 }
  0x18   :  { %v3558_v28 = vld [vmem:[#allocation2 + $0x2a0] sm:$0xf]  ;;  %v4836_v30 = vld [vmem:[#allocation2 + $0x2ac] sm:$0xf0]  ;;  %v3431_v33 = vor.u32 %v4804_v27, %v3430_v26  ;;  %1682 = vmatpush.bf16.msra.mxu3 %v3703_v25 }
  0x19   :  { %v3686_v31 = vld [vmem:[#allocation2 + $0x3a0] sm:$0xf]  ;;  %v4868_v32 = vld [vmem:[#allocation2 + $0x3ac] sm:$0xf0]  ;;  %v3559_v34 = vor.u32 %v4836_v30, %v3558_v28  ;;  %1644 = vmatpush.bf16.msra.mxu0 %v3303_v29 }
  0x1a   :  { %v3286_v35 = vld [vmem:[#allocation2 + $0x80] sm:$0xf]  ;;  %v4768_v36 = vld [vmem:[#allocation2 + $0x8c] sm:$0xf0]  ;;  %v3687_v38 = vor.u32 %v4868_v32, %v3686_v31  ;;  %1657 = vmatpush.bf16.msra.mxu1 %v3431_v33 }
  0x1b   :  { %v3414_v37 = vld [vmem:[#allocation2 + $0x180] sm:$0xf]  ;;  %v4800_v39 = vld [vmem:[#allocation2 + $0x18c] sm:$0xf0]  ;;  %v3287_v44 = vor.u32 %v4768_v36, %v3286_v35  ;;  %1670 = vmatpush.bf16.msra.mxu2 %v3559_v34 }
  0x1c   :  { %v3542_v40 = vld [vmem:[#allocation2 + $0x280] sm:$0xf]  ;;  %v4832_v41 = vld [vmem:[#allocation2 + $0x28c] sm:$0xf0]  ;;  %v3415_v45 = vor.u32 %v4800_v39, %v3414_v37  ;;  %1683 = vmatpush.bf16.msra.mxu3 %v3687_v38 }
  0x1d   :  { %v3670_v42 = vld [vmem:[#allocation2 + $0x380] sm:$0xf]  ;;  %v4864_v43 = vld [vmem:[#allocation2 + $0x38c] sm:$0xf0]  ;;  %v3543_v46 = vor.u32 %v4832_v41, %v3542_v40  ;;  %1645 = vmatpush.bf16.msra.mxu0 %v3287_v44 }
  0x1e   :  { %v3270_v47 = vld [vmem:[#allocation2 + $0x60] sm:$0xf]  ;;  %v4764_v48 = vld [vmem:[#allocation2 + $0x6c] sm:$0xf0]  ;;  %v3671_v50 = vor.u32 %v4864_v43, %v3670_v42  ;;  %1658 = vmatpush.bf16.msra.mxu1 %v3415_v45 }
  0x1f   :  { %v3398_v49 = vld [vmem:[#allocation2 + $0x160] sm:$0xf]  ;;  %v4796_v51 = vld [vmem:[#allocation2 + $0x16c] sm:$0xf0]  ;;  %v3271_v56 = vor.u32 %v4764_v48, %v3270_v47  ;;  %1671 = vmatpush.bf16.msra.mxu2 %v3543_v46 }
  0x20   :  { %v3526_v52 = vld [vmem:[#allocation2 + $0x260] sm:$0xf]  ;;  %v4828_v53 = vld [vmem:[#allocation2 + $0x26c] sm:$0xf0]  ;;  %v3399_v57 = vor.u32 %v4796_v51, %v3398_v49  ;;  %1684 = vmatpush.bf16.msra.mxu3 %v3671_v50 }
  0x21   :  { %v3654_v54 = vld [vmem:[#allocation2 + $0x360] sm:$0xf]  ;;  %v4860_v55 = vld [vmem:[#allocation2 + $0x36c] sm:$0xf0]  ;;  %v3527_v58 = vor.u32 %v4828_v53, %v3526_v52  ;;  %1646 = vmatpush.bf16.msra.mxu0 %v3271_v56 }
  0x22   :  { %v3254_v59 = vld [vmem:[#allocation2 + $0x40] sm:$0xf]  ;;  %v4760_v60 = vld [vmem:[#allocation2 + $0x4c] sm:$0xf0]  ;;  %v3655_v62 = vor.u32 %v4860_v55, %v3654_v54  ;;  %1659 = vmatpush.bf16.msra.mxu1 %v3399_v57 }
  0x23   :  { %v3382_v61 = vld [vmem:[#allocation2 + $0x140] sm:$0xf]  ;;  %v4792_v63 = vld [vmem:[#allocation2 + $0x14c] sm:$0xf0]  ;;  %v3255_v4 = vor.u32 %v4760_v60, %v3254_v59  ;;  %1672 = vmatpush.bf16.msra.mxu2 %v3527_v58 }
  0x24   :  { %v3510_v0 = vld [vmem:[#allocation2 + $0x240] sm:$0xf]  ;;  %v4824_v1 = vld [vmem:[#allocation2 + $0x24c] sm:$0xf0]  ;;  %v3383_v5 = vor.u32 %v4792_v63, %v3382_v61  ;;  %1685 = vmatpush.bf16.msra.mxu3 %v3655_v62 }
  0x25   :  { %v3638_v2 = vld [vmem:[#allocation2 + $0x340] sm:$0xf]  ;;  %v4856_v3 = vld [vmem:[#allocation2 + $0x34c] sm:$0xf0]  ;;  %v3511_v6 = vor.u32 %v4824_v1, %v3510_v0  ;;  %1647 = vmatpush.bf16.msra.mxu0 %v3255_v4 }
  0x26   :  { %v3238_v7 = vld [vmem:[#allocation2 + $0x20] sm:$0xf]  ;;  %v4756_v8 = vld [vmem:[#allocation2 + $0x2c] sm:$0xf0]  ;;  %v3639_v10 = vor.u32 %v4856_v3, %v3638_v2  ;;  %1660 = vmatpush.bf16.msra.mxu1 %v3383_v5 }
  0x27   :  { %v3366_v9 = vld [vmem:[#allocation2 + $0x120] sm:$0xf]  ;;  %v4788_v11 = vld [vmem:[#allocation2 + $0x12c] sm:$0xf0]  ;;  %v3239_v16 = vor.u32 %v4756_v8, %v3238_v7  ;;  %1673 = vmatpush.bf16.msra.mxu2 %v3511_v6 }
  0x28   :  { %v3494_v12 = vld [vmem:[#allocation2 + $0x220] sm:$0xf]  ;;  %v4820_v13 = vld [vmem:[#allocation2 + $0x22c] sm:$0xf0]  ;;  %v3367_v19 = vor.u32 %v4788_v11, %v3366_v9  ;;  %1686 = vmatpush.bf16.msra.mxu3 %v3639_v10  ;;  %v83_v10 = vld [vmem:[%s5518_s0 + $0x18] sm:$0xff] }
  0x29   :  { %v3622_v14 = vld [vmem:[#allocation2 + $0x320] sm:$0xf]  ;;  %v4852_v15 = vld [vmem:[#allocation2 + $0x32c] sm:$0xf0]  ;;  %v3495_v20 = vor.u32 %v4820_v13, %v3494_v12  ;;  %1648 = vmatpush.bf16.msra.mxu0 %v3239_v16 }
  0x2a   :  { %v3222_v17 = vld [vmem:[#allocation2] sm:$0xf]  ;;  %v4752_v18 = vld [vmem:[#allocation2 + $0xc] sm:$0xf0]  ;;  %v3623_v24 = vor.u32 %v4852_v15, %v3622_v14  ;;  %1661 = vmatpush.bf16.msra.mxu1 %v3367_v19  ;;  %v5296_v15 = vpack.c.bf16 %v83_v10, %v83_v10  ;;  %v81_v19 = vld [vmem:[%s5518_s0 + $0x8] sm:$0xff] }
  0x2b   :  { %v3350_v21 = vld [vmem:[#allocation2 + $0x100] sm:$0xf]  ;;  %v4784_v22 = vld [vmem:[#allocation2 + $0x10c] sm:$0xf0]  ;;  %v3223_v31 = vor.u32 %v4752_v18, %v3222_v17  ;;  %1674 = vmatpush.bf16.msra.mxu2 %v3495_v20  ;;  %v3464_v10 = vld [vmem:[#allocation2 + $0x1f0] sm:$0xf0] }
  0x2c   :  { %v3478_v23 = vld [vmem:[#allocation2 + $0x200] sm:$0xf]  ;;  %v4816_v25 = vld [vmem:[#allocation2 + $0x20c] sm:$0xf0]  ;;  %v3351_v35 = vor.u32 %v4784_v22, %v3350_v21  ;;  %1687 = vmatpush.bf16.msra.mxu3 %v3623_v24 }
  0x2d   :  { %v3606_v26 = vld [vmem:[#allocation2 + $0x300] sm:$0xf]  ;;  %v4848_v27 = vld [vmem:[#allocation2 + $0x30c] sm:$0xf0]  ;;  %v3479_v36 = vor.u32 %v4816_v25, %v3478_v23  ;;  %1649 = vmatpush.bf16.msra.mxu0 %v3223_v31  ;;  %v5304_v25 = vpack.c.bf16 %v81_v19, %v81_v19 }
  0x2e   :  { %v3846_v28 = vld [vmem:[#allocation2 + $0x4e0] sm:$0xf]  ;;  %v4908_v29 = vld [vmem:[#allocation2 + $0x4ec] sm:$0xf0]  ;;  %v3607_v39 = vor.u32 %v4848_v27, %v3606_v26  ;;  %1662 = vmatpush.bf16.msra.mxu1 %v3351_v35 }
  0x2f   :  { %v3974_v30 = vld [vmem:[#allocation2 + $0x5e0] sm:$0xf]  ;;  %v4940_v32 = vld [vmem:[#allocation2 + $0x5ec] sm:$0xf0]  ;;  %v3847_v40 = vor.u32 %v4908_v29, %v3846_v28  ;;  %1675 = vmatpush.bf16.msra.mxu2 %v3479_v36 }
  0x30   :  { %v4102_v33 = vld [vmem:[#allocation2 + $0x6e0] sm:$0xf]  ;;  %v4972_v34 = vld [vmem:[#allocation2 + $0x6ec] sm:$0xf0]  ;;  %v3975_v41 = vor.u32 %v4940_v32, %v3974_v30  ;;  %1688 = vmatpush.bf16.msra.mxu3 %v3607_v39 }
  0x31   :  { %v4230_v37 = vld [vmem:[#allocation2 + $0x7e0] sm:$0xf]  ;;  %v5004_v38 = vld [vmem:[#allocation2 + $0x7ec] sm:$0xf0]  ;;  %v4103_v42 = vor.u32 %v4972_v34, %v4102_v33  ;;  %1694 = vmatpush.bf16.msrb.mxu0 %v3847_v40  ;;  %1663 = vmatmul.bf16.vlgmr.msra.gmra.mxu1 %v5304_v25 }
  0x32   :  { %v3830_v43 = vld [vmem:[#allocation2 + $0x4c0] sm:$0xf]  ;;  %v4904_v44 = vld [vmem:[#allocation2 + $0x4cc] sm:$0xf0]  ;;  %v4231_v46 = vor.u32 %v5004_v38, %v4230_v37  ;;  %1707 = vmatpush.bf16.msrb.mxu1 %v3975_v41 }
  0x33   :  { %v3958_v45 = vld [vmem:[#allocation2 + $0x5c0] sm:$0xf]  ;;  %v4936_v47 = vld [vmem:[#allocation2 + $0x5cc] sm:$0xf0]  ;;  %v3831_v52 = vor.u32 %v4904_v44, %v3830_v43  ;;  %1720 = vmatpush.bf16.msrb.mxu2 %v4103_v42  ;;  %1689 = vmatmul.bf16.vlgmr.msra.gmra.mxu3 %v5296_v15 }
  0x34   :  { %v4086_v48 = vld [vmem:[#allocation2 + $0x6c0] sm:$0xf]  ;;  %v4968_v49 = vld [vmem:[#allocation2 + $0x6cc] sm:$0xf0]  ;;  %v3959_v54 = vor.u32 %v4936_v47, %v3958_v45  ;;  %1733 = vmatpush.bf16.msrb.mxu3 %v4231_v46 }
  0x35   :  { %v4214_v50 = vld [vmem:[#allocation2 + $0x7c0] sm:$0xf]  ;;  %v5000_v51 = vld [vmem:[#allocation2 + $0x7cc] sm:$0xf0]  ;;  %v4087_v55 = vor.u32 %v4968_v49, %v4086_v48  ;;  %1695 = vmatpush.bf16.msrb.mxu0 %v3831_v52 }
  0x36   :  { %v3814_v53 = vld [vmem:[#allocation2 + $0x4a0] sm:$0xf]  ;;  %v4900_v56 = vld [vmem:[#allocation2 + $0x4ac] sm:$0xf0]  ;;  %v4215_v59 = vor.u32 %v5000_v51, %v4214_v50  ;;  %1708 = vmatpush.bf16.msrb.mxu1 %v3959_v54 }
  0x37   :  { %v3942_v57 = vld [vmem:[#allocation2 + $0x5a0] sm:$0xf]  ;;  %v4932_v58 = vld [vmem:[#allocation2 + $0x5ac] sm:$0xf0]  ;;  %v3815_v0 = vor.u32 %v4900_v56, %v3814_v53  ;;  %1721 = vmatpush.bf16.msrb.mxu2 %v4087_v55 }
  0x38   :  { %v4070_v60 = vld [vmem:[#allocation2 + $0x6a0] sm:$0xf]  ;;  %v4964_v61 = vld [vmem:[#allocation2 + $0x6ac] sm:$0xf0]  ;;  %v3943_v1 = vor.u32 %v4932_v58, %v3942_v57  ;;  %1734 = vmatpush.bf16.msrb.mxu3 %v4215_v59 }
  0x39   :  { %v4198_v62 = vld [vmem:[#allocation2 + $0x7a0] sm:$0xf]  ;;  %v4996_v63 = vld [vmem:[#allocation2 + $0x7ac] sm:$0xf0]  ;;  %v4071_v5 = vor.u32 %v4964_v61, %v4070_v60  ;;  %1696 = vmatpush.bf16.msrb.mxu0 %v3815_v0 }
  0x3a   :  { %v3798_v2 = vld [vmem:[#allocation2 + $0x480] sm:$0xf]  ;;  %v82_v3 = vld [vmem:[%s5518_s0 + $0x10] sm:$0xff]  ;;  %v4199_v11 = vor.u32 %v4996_v63, %v4198_v62  ;;  %1709 = vmatpush.bf16.msrb.mxu1 %v3943_v1 }
  0x3b   :  { %v80_v4 = vld [vmem:[%s5518_s0] sm:$0xff]  ;;  %v4896_v6 = vld [vmem:[#allocation2 + $0x48c] sm:$0xf0]  ;;  %v5289_v8 = vpack.c.bf16 %v82_v3, %v82_v3  ;;  %1722 = vmatpush.bf16.msrb.mxu2 %v4071_v5  ;;  %v3336_v5 = vld [vmem:[#allocation2 + $0xf0] sm:$0xf0] }
  0x3c   :  { %v3926_v7 = vld [vmem:[#allocation2 + $0x580] sm:$0xf]  ;;  %v5291_v9 = vpack.c.bf16 %v80_v4, %v80_v4  ;;  %v4928_v12 = vld [vmem:[#allocation2 + $0x58c] sm:$0xf0]  ;;  %v3799_v18 = vor.u32 %v4896_v6, %v3798_v2  ;;  %1735 = vmatpush.bf16.msrb.mxu3 %v4199_v11  ;;  %v4778_v4 = vld [vmem:[#allocation2 + $0xe4] sm:$0xf] }
  0x3d   :  { %v4054_v13 = vld [vmem:[#allocation2 + $0x680] sm:$0xf]  ;;  %v4960_v14 = vld [vmem:[#allocation2 + $0x68c] sm:$0xf0]  ;;  %1676 = vmatmul.bf16.vlgmr.msra.gmra.mxu2 %v5289_v8  ;;  %v3927_v20 = vor.u32 %v4928_v12, %v3926_v7  ;;  %v4810_v6 = vld [vmem:[#allocation2 + $0x1e4] sm:$0xf] }
  0x3e   :  { %v4182_v16 = vld [vmem:[#allocation2 + $0x780] sm:$0xf]  ;;  %v4992_v17 = vld [vmem:[#allocation2 + $0x78c] sm:$0xf0]  ;;  %1650 = vmatmul.bf16.vlgmr.msra.gmra.mxu0 %v5291_v9  ;;  %v4055_v21 = vor.u32 %v4960_v14, %v4054_v13  ;;  %v4842_v11 = vld [vmem:[#allocation2 + $0x2e4] sm:$0xf] }
  0x3f   :  { %v3782_v22 = vld [vmem:[#allocation2 + $0x460] sm:$0xf]  ;;  %v4892_v23 = vld [vmem:[#allocation2 + $0x46c] sm:$0xf0]  ;;  %v4183_v26 = vor.u32 %v4992_v17, %v4182_v16  ;;  %1697 = vmatpush.bf16.msrb.mxu0 %v3799_v18  ;;  %1710 = vmatpush.bf16.msrb.mxu1 %v3927_v20  ;;  %v3592_v12 = vld [vmem:[#allocation2 + $0x2f0] sm:$0xf0]  ;;  %v3339_v20 = vor.u32 %v4778_v4, %v3336_v5 }
  0x40   :  { %v3910_v24 = vld [vmem:[#allocation2 + $0x560] sm:$0xf]  ;;  %v4924_v27 = vld [vmem:[#allocation2 + $0x56c] sm:$0xf0]  ;;  %v3783_v32 = vor.u32 %v4892_v23, %v3782_v22  ;;  %1723 = vmatpush.bf16.msrb.mxu2 %v4055_v21  ;;  %v4874_v16 = vld [vmem:[#allocation2 + $0x3e4] sm:$0xf] }
  0x41   :  { %v4038_v28 = vld [vmem:[#allocation2 + $0x660] sm:$0xf]  ;;  %v4956_v29 = vld [vmem:[#allocation2 + $0x66c] sm:$0xf0]  ;;  %v3911_v33 = vor.u32 %v4924_v27, %v3910_v24  ;;  %1736 = vmatpush.bf16.msrb.mxu3 %v4183_v26  ;;  %v3720_v17 = vld [vmem:[#allocation2 + $0x3f0] sm:$0xf0]  ;;  %v3467_v24 = vor.u32 %v4810_v6, %v3464_v10  ;;  %v3595_v26 = vor.u32 %v4842_v11, %v3592_v12 }
  0x42   :  { %v4166_v30 = vld [vmem:[#allocation2 + $0x760] sm:$0xf]  ;;  %v4988_v31 = vld [vmem:[#allocation2 + $0x76c] sm:$0xf0]  ;;  %v4039_v34 = vor.u32 %v4956_v29, %v4038_v28  ;;  %v4774_v21 = vld [vmem:[#allocation2 + $0xc4] sm:$0xf] }
  0x43   :  { %v3766_v35 = vld [vmem:[#allocation2 + $0x440] sm:$0xf]  ;;  %v4888_v36 = vld [vmem:[#allocation2 + $0x44c] sm:$0xf0]  ;;  %v4167_v38 = vor.u32 %v4988_v31, %v4166_v30  ;;  %1698 = vmatpush.bf16.msrb.mxu0 %v3783_v32  ;;  %1711 = vmatpush.bf16.msrb.mxu1 %v3911_v33  ;;  %v87_v23 = vld [vmem:[%s5518_s0 + $0x38] sm:$0xff]  ;;  %v3723_v30 = vor.u32 %v4874_v16, %v3720_v17 }
  0x44   :  { %v3894_v37 = vld [vmem:[#allocation2 + $0x540] sm:$0xf]  ;;  %v4920_v39 = vld [vmem:[#allocation2 + $0x54c] sm:$0xf0]  ;;  %v3767_v44 = vor.u32 %v4888_v36, %v3766_v35  ;;  %1724 = vmatpush.bf16.msrb.mxu2 %v4039_v34  ;;  %v3320_v27 = vld [vmem:[#allocation2 + $0xd0] sm:$0xf0] }
  0x45   :  { %v4022_v40 = vld [vmem:[#allocation2 + $0x640] sm:$0xf]  ;;  %v4952_v41 = vld [vmem:[#allocation2 + $0x64c] sm:$0xf0]  ;;  %v3895_v45 = vor.u32 %v4920_v39, %v3894_v37  ;;  %1737 = vmatpush.bf16.msrb.mxu3 %v4167_v38  ;;  %v4806_v28 = vld [vmem:[#allocation2 + $0x1c4] sm:$0xf]  ;;  %v5323_v38 = vpack.c.bf16 %v87_v23, %v87_v23  ;;  %v3323_v39 = vor.u32 %v4774_v21, %v3320_v27 }
  0x46   :  { %v4150_v42 = vld [vmem:[#allocation2 + $0x740] sm:$0xf]  ;;  %v4984_v43 = vld [vmem:[#allocation2 + $0x74c] sm:$0xf0]  ;;  %v4023_v46 = vor.u32 %v4952_v41, %v4022_v40  ;;  %v85_v29 = vld [vmem:[%s5518_s0 + $0x28] sm:$0xff] }
  0x47   :  { %v3750_v47 = vld [vmem:[#allocation2 + $0x420] sm:$0xf]  ;;  %v4884_v48 = vld [vmem:[#allocation2 + $0x42c] sm:$0xf0]  ;;  %v4151_v50 = vor.u32 %v4984_v43, %v4150_v42  ;;  %1699 = vmatpush.bf16.msrb.mxu0 %v3767_v44  ;;  %1712 = vmatpush.bf16.msrb.mxu1 %v3895_v45  ;;  %v3448_v31 = vld [vmem:[#allocation2 + $0x1d0] sm:$0xf0]  ;;  %v5325_v40 = vpack.c.bf16 %v85_v29, %v85_v29 }
  0x48   :  { %v3878_v49 = vld [vmem:[#allocation2 + $0x520] sm:$0xf]  ;;  %v4916_v51 = vld [vmem:[#allocation2 + $0x52c] sm:$0xf0]  ;;  %v3751_v56 = vor.u32 %v4884_v48, %v3750_v47  ;;  %1725 = vmatpush.bf16.msrb.mxu2 %v4023_v46  ;;  %v4838_v32 = vld [vmem:[#allocation2 + $0x2c4] sm:$0xf]  ;;  %v3451_v41 = vor.u32 %v4806_v28, %v3448_v31 }
  0x49   :  { %v4006_v52 = vld [vmem:[#allocation2 + $0x620] sm:$0xf]  ;;  %v4948_v53 = vld [vmem:[#allocation2 + $0x62c] sm:$0xf0]  ;;  %v3879_v59 = vor.u32 %v4916_v51, %v3878_v49  ;;  %1738 = vmatpush.bf16.msrb.mxu3 %v4151_v50  ;;  %v3576_v33 = vld [vmem:[#allocation2 + $0x2d0] sm:$0xf0] }
  0x4a   :  { %v4134_v54 = vld [vmem:[#allocation2 + $0x720] sm:$0xf]  ;;  %v4980_v55 = vld [vmem:[#allocation2 + $0x72c] sm:$0xf0]  ;;  %v4007_v60 = vor.u32 %v4948_v53, %v4006_v52  ;;  %v4870_v35 = vld [vmem:[#allocation2 + $0x3c4] sm:$0xf]  ;;  %v3579_v42 = vor.u32 %v4838_v32, %v3576_v33 }
  0x4b   :  { %v3734_v57 = vld [vmem:[#allocation2 + $0x400] sm:$0xf]  ;;  %v4880_v58 = vld [vmem:[#allocation2 + $0x40c] sm:$0xf0]  ;;  %v4135_v0 = vor.u32 %v4980_v55, %v4134_v54  ;;  %1700 = vmatpush.bf16.msrb.mxu0 %v3751_v56  ;;  %1713 = vmatpush.bf16.msrb.mxu1 %v3879_v59  ;;  %v3704_v36 = vld [vmem:[#allocation2 + $0x3d0] sm:$0xf0] }
  0x4c   :  { %v3862_v61 = vld [vmem:[#allocation2 + $0x500] sm:$0xf]  ;;  %v4912_v62 = vld [vmem:[#allocation2 + $0x50c] sm:$0xf0]  ;;  %v3735_v7 = vor.u32 %v4880_v58, %v3734_v57  ;;  %1726 = vmatpush.bf16.msrb.mxu2 %v4007_v60  ;;  %v4770_v43 = vld [vmem:[#allocation2 + $0xa4] sm:$0xf]  ;;  %v3707_v46 = vor.u32 %v4870_v35, %v3704_v36 }
  0x4d   :  { %v3990_v63 = vld [vmem:[#allocation2 + $0x600] sm:$0xf]  ;;  %v4944_v1 = vld [vmem:[#allocation2 + $0x60c] sm:$0xf0]  ;;  %v3863_v13 = vor.u32 %v4912_v62, %v3862_v61  ;;  %1739 = vmatpush.bf16.msrb.mxu3 %v4135_v0  ;;  %v3304_v44 = vld [vmem:[#allocation2 + $0xb0] sm:$0xf0] }
  0x4e   :  { %v4118_v2 = vld [vmem:[#allocation2 + $0x700] sm:$0xf]  ;;  %v4976_v3 = vld [vmem:[#allocation2 + $0x70c] sm:$0xf0]  ;;  %v3991_v14 = vor.u32 %v4944_v1, %v3990_v63  ;;  %v4802_v45 = vld [vmem:[#allocation2 + $0x1a4] sm:$0xf]  ;;  %v3307_v52 = vor.u32 %v4770_v43, %v3304_v44 }
  0x4f   :  { %v86_v18 = vld [vmem:[%s5518_s0 + $0x30] sm:$0xff]  ;;  %v4119_v19 = vor.u32 %v4976_v3, %v4118_v2  ;;  %v84_v22 = vld [vmem:[%s5518_s0 + $0x20] sm:$0xff]  ;;  %1701 = vmatpush.bf16.msrb.mxu0 %v3735_v7  ;;  %1714 = vmatpush.bf16.msrb.mxu1 %v3863_v13 }
  0x50   :  { %v5319_v34 = vpack.c.bf16 %v86_v18, %v86_v18  ;;  %1727 = vmatpush.bf16.msrb.mxu2 %v3991_v14  ;;  %v5321_v37 = vpack.c.bf16 %v84_v22, %v84_v22  ;;  %v3432_v47 = vld [vmem:[#allocation2 + $0x1b0] sm:$0xf0]  ;;  %v4834_v48 = vld [vmem:[#allocation2 + $0x2a4] sm:$0xf] }
  0x51   :  { %1740 = vmatpush.bf16.msrb.mxu3 %v4119_v19  ;;  %v3560_v49 = vld [vmem:[#allocation2 + $0x2b0] sm:$0xf0]  ;;  %v4866_v50 = vld [vmem:[#allocation2 + $0x3a4] sm:$0xf]  ;;  %v3435_v53 = vor.u32 %v4802_v45, %v3432_v47 }
  0x52   :  { %v3688_v51 = vld [vmem:[#allocation2 + $0x3b0] sm:$0xf0]  ;;  %1702 = vmatmul.bf16.vlgmr.msrb.gmra.mxu0 %v5321_v37  ;;  %1715 = vmatmul.bf16.vlgmr.msrb.gmra.mxu1 %v5325_v40  ;;  %v3563_v54 = vor.u32 %v4834_v48, %v3560_v49  ;;  %v4766_v55 = vld [vmem:[#allocation2 + $0x84] sm:$0xf] }
  0x53   :  { %1746 = vmatpush.bf16.msra.mxu0 %v3339_v20  ;;  %1759 = vmatpush.bf16.msra.mxu1 %v3467_v24  ;;  %v3288_v56 = vld [vmem:[#allocation2 + $0x90] sm:$0xf0]  ;;  %v4798_v57 = vld [vmem:[#allocation2 + $0x184] sm:$0xf]  ;;  %v3691_v58 = vor.u32 %v4866_v50, %v3688_v51 }
  0x54   :  { %1772 = vmatpush.bf16.msra.mxu2 %v3595_v26  ;;  %1741 = vmatmul.bf16.vlgmr.msrb.gmra.mxu3 %v5323_v38  ;;  %v3416_v59 = vld [vmem:[#allocation2 + $0x190] sm:$0xf0]  ;;  %v4830_v60 = vld [vmem:[#allocation2 + $0x284] sm:$0xf]  ;;  %v3291_v0 = vor.u32 %v4766_v55, %v3288_v56 }
  0x55   :  { %1785 = vmatpush.bf16.msra.mxu3 %v3723_v30  ;;  %1728 = vmatmul.bf16.vlgmr.msrb.gmra.mxu2 %v5319_v34  ;;  %v3544_v61 = vld [vmem:[#allocation2 + $0x290] sm:$0xf0]  ;;  %v4862_v62 = vld [vmem:[#allocation2 + $0x384] sm:$0xf]  ;;  %v3419_v1 = vor.u32 %v4798_v57, %v3416_v59 }
  0x56   :  { %v3672_v63 = vld [vmem:[#allocation2 + $0x390] sm:$0xf0]  ;;  %v3547_v2 = vor.u32 %v4830_v60, %v3544_v61  ;;  %v4762_v3 = vld [vmem:[#allocation2 + $0x64] sm:$0xf] }
  0x57   :  { %1747 = vmatpush.bf16.msra.mxu0 %v3323_v39  ;;  %1760 = vmatpush.bf16.msra.mxu1 %v3451_v41  ;;  %v3272_v4 = vld [vmem:[#allocation2 + $0x70] sm:$0xf0]  ;;  %v4794_v5 = vld [vmem:[#allocation2 + $0x164] sm:$0xf]  ;;  %v3675_v6 = vor.u32 %v4862_v62, %v3672_v63 }
  0x58   :  { %1773 = vmatpush.bf16.msra.mxu2 %v3579_v42  ;;  %v3400_v7 = vld [vmem:[#allocation2 + $0x170] sm:$0xf0]  ;;  %v4826_v10 = vld [vmem:[#allocation2 + $0x264] sm:$0xf]  ;;  %v3275_v14 = vor.u32 %v4762_v3, %v3272_v4 }
  0x59   :  { %1786 = vmatpush.bf16.msra.mxu3 %v3707_v46  ;;  %v3528_v11 = vld [vmem:[#allocation2 + $0x270] sm:$0xf0]  ;;  %v4858_v12 = vld [vmem:[#allocation2 + $0x364] sm:$0xf]  ;;  %v3403_v16 = vor.u32 %v4794_v5, %v3400_v7 }
  0x5a   :  { %v3656_v13 = vld [vmem:[#allocation2 + $0x370] sm:$0xf0]  ;;  %v3531_v17 = vor.u32 %v4826_v10, %v3528_v11  ;;  %v4758_v18 = vld [vmem:[#allocation2 + $0x44] sm:$0xf] }
  0x5b   :  { %1748 = vmatpush.bf16.msra.mxu0 %v3307_v52  ;;  %1761 = vmatpush.bf16.msra.mxu1 %v3435_v53  ;;  %v3256_v19 = vld [vmem:[#allocation2 + $0x50] sm:$0xf0]  ;;  %v4790_v20 = vld [vmem:[#allocation2 + $0x144] sm:$0xf]  ;;  %v3659_v21 = vor.u32 %v4858_v12, %v3656_v13 }
  0x5c   :  { %1774 = vmatpush.bf16.msra.mxu2 %v3563_v54  ;;  %v3384_v22 = vld [vmem:[#allocation2 + $0x150] sm:$0xf0]  ;;  %v4822_v23 = vld [vmem:[#allocation2 + $0x244] sm:$0xf]  ;;  %v3259_v28 = vor.u32 %v4758_v18, %v3256_v19 }
  0x5d   :  { %1787 = vmatpush.bf16.msra.mxu3 %v3691_v58  ;;  %v3512_v24 = vld [vmem:[#allocation2 + $0x250] sm:$0xf0]  ;;  %v4854_v26 = vld [vmem:[#allocation2 + $0x344] sm:$0xf]  ;;  %v3387_v29 = vor.u32 %v4790_v20, %v3384_v22 }
  0x5e   :  { %v3640_v27 = vld [vmem:[#allocation2 + $0x350] sm:$0xf0]  ;;  %v3515_v30 = vor.u32 %v4822_v23, %v3512_v24  ;;  %v4754_v31 = vld [vmem:[#allocation2 + $0x24] sm:$0xf] }
  0x5f   :  { %1749 = vmatpush.bf16.msra.mxu0 %v3291_v0  ;;  %1762 = vmatpush.bf16.msra.mxu1 %v3419_v1  ;;  %v3240_v32 = vld [vmem:[#allocation2 + $0x30] sm:$0xf0]  ;;  %v4786_v33 = vld [vmem:[#allocation2 + $0x124] sm:$0xf]  ;;  %v3643_v35 = vor.u32 %v4854_v26, %v3640_v27 }
  0x60   :  { %1775 = vmatpush.bf16.msra.mxu2 %v3547_v2  ;;  %v3368_v36 = vld [vmem:[#allocation2 + $0x130] sm:$0xf0]  ;;  %v4818_v39 = vld [vmem:[#allocation2 + $0x224] sm:$0xf]  ;;  %v3243_v44 = vor.u32 %v4754_v31, %v3240_v32 }
  0x61   :  { %1788 = vmatpush.bf16.msra.mxu3 %v3675_v6  ;;  %v3496_v41 = vld [vmem:[#allocation2 + $0x230] sm:$0xf0]  ;;  %v4850_v42 = vld [vmem:[#allocation2 + $0x324] sm:$0xf]  ;;  %v3371_v47 = vor.u32 %v4786_v33, %v3368_v36 }
  0x62   :  { %v3624_v43 = vld [vmem:[#allocation2 + $0x330] sm:$0xf0]  ;;  %v4750_v45 = vld [vmem:[#allocation2 + $0x4] sm:$0xf]  ;;  %v3499_v48 = vor.u32 %v4818_v39, %v3496_v41 }
  0x63   :  { %1750 = vmatpush.bf16.msra.mxu0 %v3275_v14  ;;  %1763 = vmatpush.bf16.msra.mxu1 %v3403_v16  ;;  %v3224_v46 = vld [vmem:[#allocation2 + $0x10] sm:$0xf0]  ;;  %v4782_v49 = vld [vmem:[#allocation2 + $0x104] sm:$0xf]  ;;  %v3627_v52 = vor.u32 %v4850_v42, %v3624_v43 }
  0x64   :  { %1776 = vmatpush.bf16.msra.mxu2 %v3531_v17  ;;  %v3352_v50 = vld [vmem:[#allocation2 + $0x110] sm:$0xf0]  ;;  %v4814_v51 = vld [vmem:[#allocation2 + $0x204] sm:$0xf]  ;;  %v3227_v59 = vor.u32 %v4750_v45, %v3224_v46 }
  0x65   :  { %1789 = vmatpush.bf16.msra.mxu3 %v3659_v21  ;;  %v3480_v53 = vld [vmem:[#allocation2 + $0x210] sm:$0xf0]  ;;  %v4846_v54 = vld [vmem:[#allocation2 + $0x304] sm:$0xf]  ;;  %v3355_v63 = vor.u32 %v4782_v49, %v3352_v50 }
  0x66   :  { %v3608_v55 = vld [vmem:[#allocation2 + $0x310] sm:$0xf0]  ;;  %v4906_v56 = vld [vmem:[#allocation2 + $0x4e4] sm:$0xf]  ;;  %v3483_v0 = vor.u32 %v4814_v51, %v3480_v53 }
  0x67   :  { %1751 = vmatpush.bf16.msra.mxu0 %v3259_v28  ;;  %1764 = vmatpush.bf16.msra.mxu1 %v3387_v29  ;;  %v3848_v57 = vld [vmem:[#allocation2 + $0x4f0] sm:$0xf0]  ;;  %v4938_v58 = vld [vmem:[#allocation2 + $0x5e4] sm:$0xf]  ;;  %v3611_v3 = vor.u32 %v4846_v54, %v3608_v55 }
  0x68   :  { %1777 = vmatpush.bf16.msra.mxu2 %v3515_v30  ;;  %v3976_v60 = vld [vmem:[#allocation2 + $0x5f0] sm:$0xf0]  ;;  %v4970_v61 = vld [vmem:[#allocation2 + $0x6e4] sm:$0xf]  ;;  %v3851_v4 = vor.u32 %v4906_v56, %v3848_v57 }
  0x69   :  { %1790 = vmatpush.bf16.msra.mxu3 %v3643_v35  ;;  %v4104_v62 = vld [vmem:[#allocation2 + $0x6f0] sm:$0xf0]  ;;  %v5002_v1 = vld [vmem:[#allocation2 + $0x7e4] sm:$0xf]  ;;  %v3979_v5 = vor.u32 %v4938_v58, %v3976_v60 }
  0x6a   :  { %v4232_v2 = vld [vmem:[#allocation2 + $0x7f0] sm:$0xf0]  ;;  %v4107_v6 = vor.u32 %v4970_v61, %v4104_v62  ;;  %v4902_v7 = vld [vmem:[#allocation2 + $0x4c4] sm:$0xf] }
  0x6b   :  { %1752 = vmatpush.bf16.msra.mxu0 %v3243_v44  ;;  %1765 = vmatpush.bf16.msra.mxu1 %v3371_v47  ;;  %v3832_v10 = vld [vmem:[#allocation2 + $0x4d0] sm:$0xf0]  ;;  %v4934_v11 = vld [vmem:[#allocation2 + $0x5c4] sm:$0xf]  ;;  %v4235_v12 = vor.u32 %v5002_v1, %v4232_v2 }
  0x6c   :  { %1778 = vmatpush.bf16.msra.mxu2 %v3499_v48  ;;  %v3960_v13 = vld [vmem:[#allocation2 + $0x5d0] sm:$0xf0]  ;;  %v4966_v14 = vld [vmem:[#allocation2 + $0x6c4] sm:$0xf]  ;;  %v3835_v19 = vor.u32 %v4902_v7, %v3832_v10 }
  0x6d   :  { %1791 = vmatpush.bf16.msra.mxu3 %v3627_v52  ;;  %v4088_v16 = vld [vmem:[#allocation2 + $0x6d0] sm:$0xf0]  ;;  %v4998_v17 = vld [vmem:[#allocation2 + $0x7c4] sm:$0xf]  ;;  %v3963_v20 = vor.u32 %v4934_v11, %v3960_v13 }
  0x6e   :  { %v4216_v18 = vld [vmem:[#allocation2 + $0x7d0] sm:$0xf0]  ;;  %v4091_v21 = vor.u32 %v4966_v14, %v4088_v16  ;;  %v4898_v22 = vld [vmem:[#allocation2 + $0x4a4] sm:$0xf] }
  0x6f   :  { %1753 = vmatpush.bf16.msra.mxu0 %v3227_v59  ;;  %1766 = vmatpush.bf16.msra.mxu1 %v3355_v63  ;;  %v3816_v23 = vld [vmem:[#allocation2 + $0x4b0] sm:$0xf0]  ;;  %v4930_v24 = vld [vmem:[#allocation2 + $0x5a4] sm:$0xf]  ;;  %v4219_v26 = vor.u32 %v4998_v17, %v4216_v18 }
  0x70   :  { %1779 = vmatpush.bf16.msra.mxu2 %v3483_v0  ;;  %v3944_v27 = vld [vmem:[#allocation2 + $0x5b0] sm:$0xf0]  ;;  %v4962_v28 = vld [vmem:[#allocation2 + $0x6a4] sm:$0xf]  ;;  %v3819_v32 = vor.u32 %v4898_v22, %v3816_v23 }
  0x71   :  { %1792 = vmatpush.bf16.msra.mxu3 %v3611_v3  ;;  %v4072_v29 = vld [vmem:[#allocation2 + $0x6b0] sm:$0xf0]  ;;  %v4994_v30 = vld [vmem:[#allocation2 + $0x7a4] sm:$0xf]  ;;  %v3947_v33 = vor.u32 %v4930_v24, %v3944_v27 }
  0x72   :  { %v4200_v31 = vld [vmem:[#allocation2 + $0x7b0] sm:$0xf0]  ;;  %1754 = vmatmul.bf16.vlgmr.msra.gmra.mxu0 %v5291_v9  ;;  %1767 = vmatmul.bf16.vlgmr.msra.gmra.mxu1 %v5304_v25  ;;  %v4075_v35 = vor.u32 %v4962_v28, %v4072_v29  ;;  %v4894_v36 = vld [vmem:[#allocation2 + $0x484] sm:$0xf] }
  0x73   :  { %1798 = vmatpush.bf16.msrb.mxu0 %v3851_v4  ;;  %1811 = vmatpush.bf16.msrb.mxu1 %v3979_v5  ;;  %v3800_v39 = vld [vmem:[#allocation2 + $0x490] sm:$0xf0]  ;;  %v4926_v41 = vld [vmem:[#allocation2 + $0x584] sm:$0xf]  ;;  %v4203_v42 = vor.u32 %v4994_v30, %v4200_v31 }
  0x74   :  { %1824 = vmatpush.bf16.msrb.mxu2 %v4107_v6  ;;  %1793 = vmatmul.bf16.vlgmr.msra.gmra.mxu3 %v5296_v15  ;;  %v3928_v43 = vld [vmem:[#allocation2 + $0x590] sm:$0xf0]  ;;  %v4958_v44 = vld [vmem:[#allocation2 + $0x684] sm:$0xf]  ;;  %v3803_v48 = vor.u32 %v4894_v36, %v3800_v39  ;;  %v3342_v39 = vld [vmem:[#allocation2 + $0xe8] sm:$0xf] }
  0x75   :  { %1837 = vmatpush.bf16.msrb.mxu3 %v4235_v12  ;;  %1780 = vmatmul.bf16.vlgmr.msra.gmra.mxu2 %v5289_v8  ;;  %v4056_v45 = vld [vmem:[#allocation2 + $0x690] sm:$0xf0]  ;;  %v4990_v46 = vld [vmem:[#allocation2 + $0x784] sm:$0xf]  ;;  %v3931_v49 = vor.u32 %v4926_v41, %v3928_v43  ;;  %v4781_v41 = vld [vmem:[#allocation2 + $0xf4] sm:$0xf0] }
  0x76   :  { %v4184_v47 = vld [vmem:[#allocation2 + $0x790] sm:$0xf0]  ;;  %v4059_v50 = vor.u32 %v4958_v44, %v4056_v45  ;;  %v4890_v51 = vld [vmem:[#allocation2 + $0x464] sm:$0xf]  ;;  %v4813_v44 = vld [vmem:[#allocation2 + $0x1f4] sm:$0xf0] }
  0x77   :  { %1799 = vmatpush.bf16.msrb.mxu0 %v3835_v19  ;;  %1812 = vmatpush.bf16.msrb.mxu1 %v3963_v20  ;;  %v3784_v52 = vld [vmem:[#allocation2 + $0x470] sm:$0xf0]  ;;  %v4922_v53 = vld [vmem:[#allocation2 + $0x564] sm:$0xf]  ;;  %v4187_v54 = vor.u32 %v4990_v46, %v4184_v47  ;;  %v3598_v45 = vld [vmem:[#allocation2 + $0x2e8] sm:$0xf] }
  0x78   :  { %1825 = vmatpush.bf16.msrb.mxu2 %v4091_v21  ;;  %v3912_v55 = vld [vmem:[#allocation2 + $0x570] sm:$0xf0]  ;;  %v4954_v56 = vld [vmem:[#allocation2 + $0x664] sm:$0xf]  ;;  %v3787_v60 = vor.u32 %v4890_v51, %v3784_v52  ;;  %v4845_v46 = vld [vmem:[#allocation2 + $0x2f4] sm:$0xf0]  ;;  %v3343_v52 = vor.u32 %v4781_v41, %v3342_v39 }
  0x79   :  { %1838 = vmatpush.bf16.msrb.mxu3 %v4219_v26  ;;  %v4040_v57 = vld [vmem:[#allocation2 + $0x670] sm:$0xf0]  ;;  %v4986_v58 = vld [vmem:[#allocation2 + $0x764] sm:$0xf]  ;;  %v3915_v61 = vor.u32 %v4922_v53, %v3912_v55  ;;  %v3326_v55 = vld [vmem:[#allocation2 + $0xc8] sm:$0xf] }
  0x7a   :  { %v4168_v59 = vld [vmem:[#allocation2 + $0x770] sm:$0xf0]  ;;  %v4043_v62 = vor.u32 %v4954_v56, %v4040_v57  ;;  %v4886_v63 = vld [vmem:[#allocation2 + $0x444] sm:$0xf]  ;;  %v4777_v56 = vld [vmem:[#allocation2 + $0xd4] sm:$0xf0] }
  0x7b   :  { %1800 = vmatpush.bf16.msrb.mxu0 %v3819_v32  ;;  %1813 = vmatpush.bf16.msrb.mxu1 %v3947_v33  ;;  %v3768_v0 = vld [vmem:[#allocation2 + $0x450] sm:$0xf0]  ;;  %v4918_v1 = vld [vmem:[#allocation2 + $0x544] sm:$0xf]  ;;  %v4171_v2 = vor.u32 %v4986_v58, %v4168_v59  ;;  %v3454_v57 = vld [vmem:[#allocation2 + $0x1c8] sm:$0xf] }
  0x7c   :  { %1826 = vmatpush.bf16.msrb.mxu2 %v4075_v35  ;;  %v3896_v3 = vld [vmem:[#allocation2 + $0x550] sm:$0xf0]  ;;  %v4950_v4 = vld [vmem:[#allocation2 + $0x644] sm:$0xf]  ;;  %v3771_v10 = vor.u32 %v4886_v63, %v3768_v0  ;;  %v4809_v59 = vld [vmem:[#allocation2 + $0x1d4] sm:$0xf0]  ;;  %v3327_v0 = vor.u32 %v4777_v56, %v3326_v55 }
  0x7d   :  { %1839 = vmatpush.bf16.msrb.mxu3 %v4203_v42  ;;  %v4024_v5 = vld [vmem:[#allocation2 + $0x650] sm:$0xf0]  ;;  %v4982_v6 = vld [vmem:[#allocation2 + $0x744] sm:$0xf]  ;;  %v3899_v11 = vor.u32 %v4918_v1, %v3896_v3  ;;  %v3470_v42 = vld [vmem:[#allocation2 + $0x1e8] sm:$0xf]  ;;  %v3455_v1 = vor.u32 %v4809_v59, %v3454_v57 }
  0x7e   :  { %v4152_v7 = vld [vmem:[#allocation2 + $0x750] sm:$0xf0]  ;;  %v4027_v12 = vor.u32 %v4950_v4, %v4024_v5  ;;  %v4882_v13 = vld [vmem:[#allocation2 + $0x424] sm:$0xf]  ;;  %v3471_v53 = vor.u32 %v4813_v44, %v3470_v42  ;;  %v4873_v63 = vld [vmem:[#allocation2 + $0x3d4] sm:$0xf0] }
  0x7f   :  { %1801 = vmatpush.bf16.msrb.mxu0 %v3803_v48  ;;  %1814 = vmatpush.bf16.msrb.mxu1 %v3931_v49  ;;  %v3752_v14 = vld [vmem:[#allocation2 + $0x430] sm:$0xf0]  ;;  %v4914_v16 = vld [vmem:[#allocation2 + $0x524] sm:$0xf]  ;;  %v4155_v17 = vor.u32 %v4982_v6, %v4152_v7  ;;  %v3726_v49 = vld [vmem:[#allocation2 + $0x3e8] sm:$0xf] }
  0x80   :  { %1827 = vmatpush.bf16.msrb.mxu2 %v4059_v50  ;;  %v3880_v18 = vld [vmem:[#allocation2 + $0x530] sm:$0xf0]  ;;  %v4946_v19 = vld [vmem:[#allocation2 + $0x624] sm:$0xf]  ;;  %v3755_v23 = vor.u32 %v4882_v13, %v3752_v14  ;;  %v4877_v50 = vld [vmem:[#allocation2 + $0x3f4] sm:$0xf0] }
  0x81   :  { %1840 = vmatpush.bf16.msrb.mxu3 %v4187_v54  ;;  %v4008_v20 = vld [vmem:[#allocation2 + $0x630] sm:$0xf0]  ;;  %v4978_v21 = vld [vmem:[#allocation2 + $0x724] sm:$0xf]  ;;  %v3883_v27 = vor.u32 %v4914_v16, %v3880_v18  ;;  %v3599_v54 = vor.u32 %v4845_v46, %v3598_v45  ;;  %v3727_v58 = vor.u32 %v4877_v50, %v3726_v49  ;;  %v3310_v3 = vld [vmem:[#allocation2 + $0xa8] sm:$0xf] }
  0x82   :  { %v4136_v22 = vld [vmem:[#allocation2 + $0x730] sm:$0xf0]  ;;  %v4878_v24 = vld [vmem:[#allocation2 + $0x404] sm:$0xf]  ;;  %v4011_v28 = vor.u32 %v4946_v19, %v4008_v20  ;;  %v4773_v4 = vld [vmem:[#allocation2 + $0xb4] sm:$0xf0] }
  0x83   :  { %1802 = vmatpush.bf16.msrb.mxu0 %v3787_v60  ;;  %1815 = vmatpush.bf16.msrb.mxu1 %v3915_v61  ;;  %v3736_v26 = vld [vmem:[#allocation2 + $0x410] sm:$0xf0]  ;;  %v4910_v29 = vld [vmem:[#allocation2 + $0x504] sm:$0xf]  ;;  %v4139_v32 = vor.u32 %v4978_v21, %v4136_v22  ;;  %v3582_v60 = vld [vmem:[#allocation2 + $0x2c8] sm:$0xf]  ;;  %v3311_v14 = vor.u32 %v4773_v4, %v3310_v3 }
  0x84   :  { %1828 = vmatpush.bf16.msrb.mxu2 %v4043_v62  ;;  %v3864_v30 = vld [vmem:[#allocation2 + $0x510] sm:$0xf0]  ;;  %v4942_v31 = vld [vmem:[#allocation2 + $0x604] sm:$0xf]  ;;  %v3739_v43 = vor.u32 %v4878_v24, %v3736_v26  ;;  %v4841_v61 = vld [vmem:[#allocation2 + $0x2d4] sm:$0xf0] }
  0x85   :  { %1841 = vmatpush.bf16.msrb.mxu3 %v4171_v2  ;;  %v3992_v33 = vld [vmem:[#allocation2 + $0x610] sm:$0xf0]  ;;  %v4974_v35 = vld [vmem:[#allocation2 + $0x704] sm:$0xf]  ;;  %v3867_v47 = vor.u32 %v4910_v29, %v3864_v30  ;;  %v3710_v62 = vld [vmem:[#allocation2 + $0x3c8] sm:$0xf]  ;;  %v3583_v2 = vor.u32 %v4841_v61, %v3582_v60 }
  0x86   :  { %v4120_v36 = vld [vmem:[#allocation2 + $0x710] sm:$0xf0]  ;;  %v3995_v48 = vor.u32 %v4942_v31, %v3992_v33  ;;  %v3438_v5 = vld [vmem:[#allocation2 + $0x1a8] sm:$0xf]  ;;  %v3711_v6 = vor.u32 %v4873_v63, %v3710_v62  ;;  %v4805_v7 = vld [vmem:[#allocation2 + $0x1b4] sm:$0xf0] }
  0x87   :  { %1803 = vmatpush.bf16.msrb.mxu0 %v3771_v10  ;;  %1816 = vmatpush.bf16.msrb.mxu1 %v3899_v11  ;;  %v4123_v51 = vor.u32 %v4974_v35, %v4120_v36  ;;  %v3566_v10 = vld [vmem:[#allocation2 + $0x2a8] sm:$0xf]  ;;  %v4837_v11 = vld [vmem:[#allocation2 + $0x2b4] sm:$0xf0]  ;;  %v3439_v16 = vor.u32 %v4805_v7, %v3438_v5 }
  0x88   :  { %1829 = vmatpush.bf16.msrb.mxu2 %v4027_v12  ;;  %v3694_v12 = vld [vmem:[#allocation2 + $0x3a8] sm:$0xf]  ;;  %v4869_v13 = vld [vmem:[#allocation2 + $0x3b4] sm:$0xf0] }
  0x89   :  { %1842 = vmatpush.bf16.msrb.mxu3 %v4155_v17  ;;  %v3567_v17 = vor.u32 %v4837_v11, %v3566_v10  ;;  %v3294_v18 = vld [vmem:[#allocation2 + $0x88] sm:$0xf]  ;;  %v4769_v19 = vld [vmem:[#allocation2 + $0x94] sm:$0xf0]  ;;  %v3695_v21 = vor.u32 %v4869_v13, %v3694_v12 }
  0x8a   :  { %v3422_v20 = vld [vmem:[#allocation2 + $0x188] sm:$0xf]  ;;  %v4801_v22 = vld [vmem:[#allocation2 + $0x194] sm:$0xf0] }
  0x8b   :  { %1804 = vmatpush.bf16.msrb.mxu0 %v3755_v23  ;;  %1817 = vmatpush.bf16.msrb.mxu1 %v3883_v27  ;;  %v3550_v23 = vld [vmem:[#allocation2 + $0x288] sm:$0xf]  ;;  %v4833_v24 = vld [vmem:[#allocation2 + $0x294] sm:$0xf0]  ;;  %v3423_v29 = vor.u32 %v4801_v22, %v3422_v20 }
  0x8c   :  { %1830 = vmatpush.bf16.msrb.mxu2 %v4011_v28  ;;  %v3678_v26 = vld [vmem:[#allocation2 + $0x388] sm:$0xf]  ;;  %v4865_v27 = vld [vmem:[#allocation2 + $0x394] sm:$0xf0]  ;;  %v3295_v28 = vor.u32 %v4769_v19, %v3294_v18  ;;  %v3551_v30 = vor.u32 %v4833_v24, %v3550_v23 }
  0x8d   :  { %1843 = vmatpush.bf16.msrb.mxu3 %v4139_v32  ;;  %v3278_v31 = vld [vmem:[#allocation2 + $0x68] sm:$0xf]  ;;  %v4765_v32 = vld [vmem:[#allocation2 + $0x74] sm:$0xf0]  ;;  %v3679_v35 = vor.u32 %v4865_v27, %v3678_v26 }
  0x8e   :  { %v3406_v33 = vld [vmem:[#allocation2 + $0x168] sm:$0xf]  ;;  %v4797_v36 = vld [vmem:[#allocation2 + $0x174] sm:$0xf0]  ;;  %v3279_v44 = vor.u32 %v4765_v32, %v3278_v31 }
  0x8f   :  { %1805 = vmatpush.bf16.msrb.mxu0 %v3739_v43  ;;  %1818 = vmatpush.bf16.msrb.mxu1 %v3867_v47  ;;  %v3534_v39 = vld [vmem:[#allocation2 + $0x268] sm:$0xf]  ;;  %v4829_v41 = vld [vmem:[#allocation2 + $0x274] sm:$0xf0]  ;;  %v3407_v45 = vor.u32 %v4797_v36, %v3406_v33 }
  0x90   :  { %1831 = vmatpush.bf16.msrb.mxu2 %v3995_v48  ;;  %v3662_v42 = vld [vmem:[#allocation2 + $0x368] sm:$0xf]  ;;  %v4861_v43 = vld [vmem:[#allocation2 + $0x374] sm:$0xf0]  ;;  %v3535_v46 = vor.u32 %v4829_v41, %v3534_v39 }
  0x91   :  { %1844 = vmatpush.bf16.msrb.mxu3 %v4123_v51  ;;  %v3262_v47 = vld [vmem:[#allocation2 + $0x48] sm:$0xf]  ;;  %v4761_v48 = vld [vmem:[#allocation2 + $0x54] sm:$0xf0]  ;;  %v3663_v50 = vor.u32 %v4861_v43, %v3662_v42 }
  0x92   :  { %1806 = vmatmul.bf16.vlgmr.msrb.gmra.mxu0 %v5321_v37  ;;  %1819 = vmatmul.bf16.vlgmr.msrb.gmra.mxu1 %v5325_v40  ;;  %v3390_v49 = vld [vmem:[#allocation2 + $0x148] sm:$0xf]  ;;  %v4793_v51 = vld [vmem:[#allocation2 + $0x154] sm:$0xf0]  ;;  %v3263_v56 = vor.u32 %v4761_v48, %v3262_v47 }
  0x93   :  { %1850 = vmatpush.bf16.msra.mxu0 %v3343_v52  ;;  %1863 = vmatpush.bf16.msra.mxu1 %v3471_v53  ;;  %v3518_v52 = vld [vmem:[#allocation2 + $0x248] sm:$0xf]  ;;  %v4825_v53 = vld [vmem:[#allocation2 + $0x254] sm:$0xf0]  ;;  %v3391_v57 = vor.u32 %v4793_v51, %v3390_v49 }
  0x94   :  { %1876 = vmatpush.bf16.msra.mxu2 %v3599_v54  ;;  %1845 = vmatmul.bf16.vlgmr.msrb.gmra.mxu3 %v5323_v38  ;;  %v3646_v54 = vld [vmem:[#allocation2 + $0x348] sm:$0xf]  ;;  %v4857_v55 = vld [vmem:[#allocation2 + $0x354] sm:$0xf0] }
  0x95   :  { %1889 = vmatpush.bf16.msra.mxu3 %v3727_v58  ;;  %1832 = vmatmul.bf16.vlgmr.msrb.gmra.mxu2 %v5319_v34  ;;  %v3519_v58 = vor.u32 %v4825_v53, %v3518_v52  ;;  %v3246_v59 = vld [vmem:[#allocation2 + $0x28] sm:$0xf]  ;;  %v4757_v60 = vld [vmem:[#allocation2 + $0x34] sm:$0xf0]  ;;  %v3647_v62 = vor.u32 %v4857_v55, %v3646_v54 }
  0x96   :  { %v3374_v61 = vld [vmem:[#allocation2 + $0x128] sm:$0xf]  ;;  %v4789_v63 = vld [vmem:[#allocation2 + $0x134] sm:$0xf0]  ;;  %v3247_v4 = vor.u32 %v4757_v60, %v3246_v59 }
  0x97   :  { %1851 = vmatpush.bf16.msra.mxu0 %v3327_v0  ;;  %1864 = vmatpush.bf16.msra.mxu1 %v3455_v1  ;;  %v3502_v0 = vld [vmem:[#allocation2 + $0x228] sm:$0xf]  ;;  %v4821_v1 = vld [vmem:[#allocation2 + $0x234] sm:$0xf0]  ;;  %v3375_v7 = vor.u32 %v4789_v63, %v3374_v61 }
  0x98   :  { %1877 = vmatpush.bf16.msra.mxu2 %v3583_v2  ;;  %v3630_v2 = vld [vmem:[#allocation2 + $0x328] sm:$0xf]  ;;  %v4853_v3 = vld [vmem:[#allocation2 + $0x334] sm:$0xf0]  ;;  %v3503_v10 = vor.u32 %v4821_v1, %v3502_v0 }
  0x99   :  { %1890 = vmatpush.bf16.msra.mxu3 %v3711_v6  ;;  %v3230_v5 = vld [vmem:[#allocation2 + $0x8] sm:$0xf]  ;;  %v4753_v6 = vld [vmem:[#allocation2 + $0x14] sm:$0xf0] }
  0x9a   :  { %v3358_v11 = vld [vmem:[#allocation2 + $0x108] sm:$0xf]  ;;  %v4785_v12 = vld [vmem:[#allocation2 + $0x114] sm:$0xf0]  ;;  %v3231_v22 = vor.u32 %v4753_v6, %v3230_v5  ;;  %v5346_v6 = vld [vmem:[%s5520_s2] sm:$0xf] }
  0x9b   :  { %1852 = vmatpush.bf16.msra.mxu0 %v3311_v14  ;;  %1865 = vmatpush.bf16.msra.mxu1 %v3439_v16  ;;  %v3486_v13 = vld [vmem:[#allocation2 + $0x208] sm:$0xf]  ;;  %v3631_v14 = vor.u32 %v4853_v3, %v3630_v2  ;;  %v4817_v16 = vld [vmem:[#allocation2 + $0x214] sm:$0xf0]  ;;  %v3359_v27 = vor.u32 %v4785_v12, %v3358_v11 }
  0x9c   :  { %1878 = vmatpush.bf16.msra.mxu2 %v3567_v17  ;;  %v3614_v17 = vld [vmem:[#allocation2 + $0x308] sm:$0xf]  ;;  %v4849_v18 = vld [vmem:[#allocation2 + $0x314] sm:$0xf0] }
  0x9d   :  { %1891 = vmatpush.bf16.msra.mxu3 %v3695_v21  ;;  %v3854_v19 = vld [vmem:[#allocation2 + $0x4e8] sm:$0xf]  ;;  %v4909_v20 = vld [vmem:[#allocation2 + $0x4f4] sm:$0xf0]  ;;  %v3615_v31 = vor.u32 %v4849_v18, %v3614_v17  ;;  %v354_v18 = vperm.slane %v5346_v6, 0 }
  0x9e   :  { %v3982_v21 = vld [vmem:[#allocation2 + $0x5e8] sm:$0xf]  ;;  %v4941_v23 = vld [vmem:[#allocation2 + $0x5f4] sm:$0xf0]  ;;  %v3855_v32 = vor.u32 %v4909_v20, %v3854_v19 }
  0x9f   :  { %1853 = vmatpush.bf16.msra.mxu0 %v3295_v28  ;;  %1866 = vmatpush.bf16.msra.mxu1 %v3423_v29  ;;  %v4110_v24 = vld [vmem:[#allocation2 + $0x6e8] sm:$0xf]  ;;  %v4973_v26 = vld [vmem:[#allocation2 + $0x6f4] sm:$0xf0]  ;;  %v3487_v28 = vor.u32 %v4817_v16, %v3486_v13  ;;  %v3983_v33 = vor.u32 %v4941_v23, %v3982_v21 }
  0xa0   :  { %1879 = vmatpush.bf16.msra.mxu2 %v3551_v30  ;;  %v4238_v29 = vld [vmem:[#allocation2 + $0x7e8] sm:$0xf]  ;;  %v5005_v30 = vld [vmem:[#allocation2 + $0x7f4] sm:$0xf0] }
  0xa1   :  { %1892 = vmatpush.bf16.msra.mxu3 %v3679_v35  ;;  %v4111_v35 = vor.u32 %v4973_v26, %v4110_v24  ;;  %v3838_v36 = vld [vmem:[#allocation2 + $0x4c8] sm:$0xf]  ;;  %v4905_v39 = vld [vmem:[#allocation2 + $0x4d4] sm:$0xf0]  ;;  %v4239_v42 = vor.u32 %v5005_v30, %v4238_v29 }
  0xa2   :  { %v3966_v41 = vld [vmem:[#allocation2 + $0x5c8] sm:$0xf]  ;;  %v4937_v43 = vld [vmem:[#allocation2 + $0x5d4] sm:$0xf0]  ;;  %v3839_v48 = vor.u32 %v4905_v39, %v3838_v36 }
  0xa3   :  { %1854 = vmatpush.bf16.msra.mxu0 %v3279_v44  ;;  %1867 = vmatpush.bf16.msra.mxu1 %v3407_v45  ;;  %v4094_v44 = vld [vmem:[#allocation2 + $0x6c8] sm:$0xf]  ;;  %v4969_v45 = vld [vmem:[#allocation2 + $0x6d4] sm:$0xf0]  ;;  %v3967_v49 = vor.u32 %v4937_v43, %v3966_v41 }
  0xa4   :  { %1880 = vmatpush.bf16.msra.mxu2 %v3535_v46  ;;  %v4222_v46 = vld [vmem:[#allocation2 + $0x7c8] sm:$0xf]  ;;  %v5001_v47 = vld [vmem:[#allocation2 + $0x7d4] sm:$0xf0] }
  0xa5   :  { %1893 = vmatpush.bf16.msra.mxu3 %v3663_v50  ;;  %v4095_v50 = vor.u32 %v4969_v45, %v4094_v44  ;;  %v3822_v51 = vld [vmem:[#allocation2 + $0x4a8] sm:$0xf]  ;;  %v4901_v52 = vld [vmem:[#allocation2 + $0x4b4] sm:$0xf0]  ;;  %v4223_v54 = vor.u32 %v5001_v47, %v4222_v46 }
  0xa6   :  { %v3950_v53 = vld [vmem:[#allocation2 + $0x5a8] sm:$0xf]  ;;  %v4933_v55 = vld [vmem:[#allocation2 + $0x5b4] sm:$0xf0]  ;;  %v3823_v60 = vor.u32 %v4901_v52, %v3822_v51 }
  0xa7   :  { %1855 = vmatpush.bf16.msra.mxu0 %v3263_v56  ;;  %1868 = vmatpush.bf16.msra.mxu1 %v3391_v57  ;;  %v4078_v56 = vld [vmem:[#allocation2 + $0x6a8] sm:$0xf]  ;;  %v4965_v57 = vld [vmem:[#allocation2 + $0x6b4] sm:$0xf0] }
  0xa8   :  { %1881 = vmatpush.bf16.msra.mxu2 %v3519_v58  ;;  %v4206_v58 = vld [vmem:[#allocation2 + $0x7a8] sm:$0xf]  ;;  %v4997_v59 = vld [vmem:[#allocation2 + $0x7b4] sm:$0xf0]  ;;  %v4079_v63 = vor.u32 %v4965_v57, %v4078_v56 }
  0xa9   :  { %1894 = vmatpush.bf16.msra.mxu3 %v3647_v62  ;;  %v3806_v61 = vld [vmem:[#allocation2 + $0x488] sm:$0xf]  ;;  %v3951_v62 = vor.u32 %v4933_v55, %v3950_v53  ;;  %v4897_v0 = vld [vmem:[#allocation2 + $0x494] sm:$0xf0]  ;;  %v4207_v3 = vor.u32 %v4997_v59, %v4206_v58 }
  0xaa   :  { %v3934_v1 = vld [vmem:[#allocation2 + $0x588] sm:$0xf]  ;;  %v4929_v2 = vld [vmem:[#allocation2 + $0x594] sm:$0xf0]  ;;  %v3807_v11 = vor.u32 %v4897_v0, %v3806_v61 }
  0xab   :  { %1856 = vmatpush.bf16.msra.mxu0 %v3247_v4  ;;  %1869 = vmatpush.bf16.msra.mxu1 %v3375_v7  ;;  %v4062_v4 = vld [vmem:[#allocation2 + $0x688] sm:$0xf]  ;;  %v4961_v5 = vld [vmem:[#allocation2 + $0x694] sm:$0xf0]  ;;  %v3935_v13 = vor.u32 %v4929_v2, %v3934_v1 }
  0xac   :  { %1882 = vmatpush.bf16.msra.mxu2 %v3503_v10  ;;  %v4190_v7 = vld [vmem:[#allocation2 + $0x788] sm:$0xf]  ;;  %v4993_v10 = vld [vmem:[#allocation2 + $0x794] sm:$0xf0] }
  0xad   :  { %1895 = vmatpush.bf16.msra.mxu3 %v3631_v14  ;;  %v3790_v12 = vld [vmem:[#allocation2 + $0x468] sm:$0xf]  ;;  %v4063_v14 = vor.u32 %v4961_v5, %v4062_v4  ;;  %v4893_v16 = vld [vmem:[#allocation2 + $0x474] sm:$0xf0]  ;;  %v4191_v19 = vor.u32 %v4993_v10, %v4190_v7 }
  0xae   :  { %v3918_v17 = vld [vmem:[#allocation2 + $0x568] sm:$0xf]  ;;  %v4925_v20 = vld [vmem:[#allocation2 + $0x574] sm:$0xf0]  ;;  %v3791_v26 = vor.u32 %v4893_v16, %v3790_v12  ;;  %v1664_v45 = vpop.f32.mrf.mxu1  ;;  %v3344_v16 = vld [vmem:[#allocation2 + $0xf8] sm:$0xf0] }
  0xaf   :  { %1857 = vmatpush.bf16.msra.mxu0 %v3231_v22  ;;  %1870 = vmatpush.bf16.msra.mxu1 %v3359_v27  ;;  %v4046_v21 = vld [vmem:[#allocation2 + $0x668] sm:$0xf]  ;;  %v4957_v22 = vld [vmem:[#allocation2 + $0x674] sm:$0xf0] }
  0xb0   :  { %1883 = vmatpush.bf16.msra.mxu2 %v3487_v28  ;;  %v4174_v23 = vld [vmem:[#allocation2 + $0x768] sm:$0xf]  ;;  %v4989_v24 = vld [vmem:[#allocation2 + $0x774] sm:$0xf0]  ;;  %v3919_v28 = vor.u32 %v4925_v20, %v3918_v17  ;;  %v4047_v29 = vor.u32 %v4957_v22, %v4046_v21  ;;  %v4811_v17 = vld [vmem:[#allocation2 + $0x1ec] sm:$0xf] }
  0xb1   :  { %1896 = vmatpush.bf16.msra.mxu3 %v3615_v31  ;;  %v3774_v30 = vld [vmem:[#allocation2 + $0x448] sm:$0xf]  ;;  %v4889_v31 = vld [vmem:[#allocation2 + $0x454] sm:$0xf0]  ;;  %v4843_v20 = vld [vmem:[#allocation2 + $0x2ec] sm:$0xf] }
  0xb2   :  { %1858 = vmatmul.bf16.vlgmr.msra.gmra.mxu0 %v5291_v9  ;;  %1871 = vmatmul.bf16.vlgmr.msra.gmra.mxu1 %v5304_v25  ;;  %v4921_v36 = vld [vmem:[#allocation2 + $0x554] sm:$0xf0]  ;;  %v4030_v39 = vld [vmem:[#allocation2 + $0x648] sm:$0xf]  ;;  %v3775_v44 = vor.u32 %v4889_v31, %v3774_v30  ;;  %v3600_v21 = vld [vmem:[#allocation2 + $0x2f8] sm:$0xf0] }
  0xb3   :  { %1902 = vmatpush.bf16.msrb.mxu0 %v3855_v32  ;;  %1915 = vmatpush.bf16.msrb.mxu1 %v3983_v33  ;;  %v3902_v32 = vld [vmem:[#allocation2 + $0x548] sm:$0xf]  ;;  %v4953_v41 = vld [vmem:[#allocation2 + $0x654] sm:$0xf0] }
  0xb4   :  { %1928 = vmatpush.bf16.msrb.mxu2 %v4111_v35  ;;  %1897 = vmatmul.bf16.vlgmr.msra.gmra.mxu3 %v5296_v15  ;;  %v4175_v35 = vor.u32 %v4989_v24, %v4174_v23  ;;  %v4985_v43 = vld [vmem:[#allocation2 + $0x754] sm:$0xf0]  ;;  %v3903_v46 = vor.u32 %v4921_v36, %v3902_v32  ;;  %v4031_v47 = vor.u32 %v4953_v41, %v4030_v39  ;;  %v4142_v57 = vld [vmem:[#allocation2 + $0x728] sm:$0xf]  ;;  %v4807_v36 = vld [vmem:[#allocation2 + $0x1cc] sm:$0xf] }
  0xb5   :  { %1941 = vmatpush.bf16.msrb.mxu3 %v4239_v42  ;;  %1884 = vmatmul.bf16.vlgmr.msra.gmra.mxu2 %v5289_v8  ;;  %v4158_v42 = vld [vmem:[#allocation2 + $0x748] sm:$0xf]  ;;  %v4917_v53 = vld [vmem:[#allocation2 + $0x534] sm:$0xf0]  ;;  %v3603_v32 = vor.u32 %v4843_v20, %v3600_v21 }
  0xb6   :  { %v4159_v52 = vor.u32 %v4985_v43, %v4158_v42  ;;  %v4949_v55 = vld [vmem:[#allocation2 + $0x634] sm:$0xf0]  ;;  %v3998_v5 = vld [vmem:[#allocation2 + $0x608] sm:$0xf]  ;;  %v1666_v22 = vpop.f32.mrf.mxu1  ;;  %v3456_v42 = vld [vmem:[#allocation2 + $0x1d8] sm:$0xf0] }
  0xb7   :  { %1903 = vmatpush.bf16.msrb.mxu0 %v3839_v48  ;;  %1916 = vmatpush.bf16.msrb.mxu1 %v3967_v49  ;;  %v3758_v48 = vld [vmem:[#allocation2 + $0x428] sm:$0xf]  ;;  %v4885_v49 = vld [vmem:[#allocation2 + $0x434] sm:$0xf0]  ;;  %v4839_v43 = vld [vmem:[#allocation2 + $0x2cc] sm:$0xf] }
  0xb8   :  { %1929 = vmatpush.bf16.msrb.mxu2 %v4095_v50  ;;  %v3886_v50 = vld [vmem:[#allocation2 + $0x528] sm:$0xf]  ;;  %v4981_v58 = vld [vmem:[#allocation2 + $0x734] sm:$0xf0]  ;;  %v3759_v61 = vor.u32 %v4885_v49, %v3758_v48  ;;  %v3459_v48 = vor.u32 %v4807_v36, %v3456_v42  ;;  %v3408_v22 = vld [vmem:[#allocation2 + $0x178] sm:$0xf0] }
  0xb9   :  { %1942 = vmatpush.bf16.msrb.mxu3 %v4223_v54  ;;  %v4014_v54 = vld [vmem:[#allocation2 + $0x628] sm:$0xf]  ;;  %v3887_v1 = vor.u32 %v4917_v53, %v3886_v50  ;;  %v4913_v4 = vld [vmem:[#allocation2 + $0x514] sm:$0xf0]  ;;  %v4143_v10 = vor.u32 %v4981_v58, %v4142_v57  ;;  %v4771_v50 = vld [vmem:[#allocation2 + $0xac] sm:$0xf] }
  0xba   :  { %v4015_v2 = vor.u32 %v4949_v55, %v4014_v54  ;;  %v4126_v12 = vld [vmem:[#allocation2 + $0x708] sm:$0xf]  ;;  %v3440_v54 = vld [vmem:[#allocation2 + $0x1b8] sm:$0xf0]  ;;  %v4835_v55 = vld [vmem:[#allocation2 + $0x2ac] sm:$0xf] }
  0xbb   :  { %1904 = vmatpush.bf16.msrb.mxu0 %v3823_v60  ;;  %1917 = vmatpush.bf16.msrb.mxu1 %v3951_v62  ;;  %v1651_v27 = vpop.f32.mrf.mxu0  ;;  %v1690_v60 = vpop.f32.mrf.mxu3  ;;  %v3742_v62 = vld [vmem:[#allocation2 + $0x408] sm:$0xf]  ;;  %v4867_v57 = vld [vmem:[#allocation2 + $0x3ac] sm:$0xf]  ;;  %v3696_v58 = vld [vmem:[#allocation2 + $0x3b8] sm:$0xf0] }
  0xbc   :  { %1930 = vmatpush.bf16.msrb.mxu2 %v4079_v63  ;;  %v1652_v33 = vadd.f32 %v1651_v27, %v354_v18  ;;  %v4881_v63 = vld [vmem:[#allocation2 + $0x414] sm:$0xf0]  ;;  %v3728_v27 = vld [vmem:[#allocation2 + $0x3f8] sm:$0xf0] }
  0xbd   :  { %1943 = vmatpush.bf16.msrb.mxu3 %v4207_v3  ;;  %v3870_v3 = vld [vmem:[#allocation2 + $0x508] sm:$0xf]  ;;  %v3743_v18 = vor.u32 %v4881_v63, %v3742_v62  ;;  %v4767_v62 = vld [vmem:[#allocation2 + $0x8c] sm:$0xf]  ;;  %v3296_v63 = vld [vmem:[#allocation2 + $0x98] sm:$0xf0] }
  0xbe   :  { %v1665_v51 = vadd.f32 %v1664_v45, %v1652_v33  ;;  %v3871_v23 = vor.u32 %v4913_v4, %v3870_v3  ;;  %v4775_v33 = vld [vmem:[#allocation2 + $0xcc] sm:$0xf]  ;;  %v3552_v4 = vld [vmem:[#allocation2 + $0x298] sm:$0xf0] }
  0xbf   :  { %1905 = vmatpush.bf16.msrb.mxu0 %v3807_v11  ;;  %1918 = vmatpush.bf16.msrb.mxu1 %v3935_v13  ;;  %v4945_v11 = vld [vmem:[#allocation2 + $0x614] sm:$0xf0]  ;;  %v4871_v45 = vld [vmem:[#allocation2 + $0x3cc] sm:$0xf]  ;;  %v3520_v42 = vld [vmem:[#allocation2 + $0x258] sm:$0xf0] }
  0xc0   :  { %1931 = vmatpush.bf16.msrb.mxu2 %v4063_v14  ;;  %v1677_v56 = vpop.f32.mrf.mxu2  ;;  %v4977_v13 = vld [vmem:[#allocation2 + $0x714] sm:$0xf0]  ;;  %v4779_v14 = vld [vmem:[#allocation2 + $0xec] sm:$0xf]  ;;  %v3999_v24 = vor.u32 %v4945_v11, %v3998_v5  ;;  %v3299_v11 = vor.u32 %v4767_v62, %v3296_v63 }
  0xc1   :  { %1944 = vmatpush.bf16.msrb.mxu3 %v4191_v19  ;;  %v1678_v59 = vadd.f32 %v1677_v56, %v1665_v51  ;;  %v3472_v19 = vld [vmem:[#allocation2 + $0x1f8] sm:$0xf0]  ;;  %v4831_v3 = vld [vmem:[#allocation2 + $0x28c] sm:$0xf] }
  0xc2   :  { %v3475_v31 = vor.u32 %v4811_v17, %v3472_v19  ;;  %v3312_v51 = vld [vmem:[#allocation2 + $0xb8] sm:$0xf0]  ;;  %v4863_v5 = vld [vmem:[#allocation2 + $0x38c] sm:$0xf] }
  0xc3   :  { %1906 = vmatpush.bf16.msrb.mxu0 %v3791_v26  ;;  %1919 = vmatpush.bf16.msrb.mxu1 %v3919_v28  ;;  %v1653_v0 = vpop.f32.mrf.mxu0  ;;  %v5349_v7 = vadd.f32 %v1690_v60, %v1678_v59  ;;  %v4875_v26 = vld [vmem:[#allocation2 + $0x3ec] sm:$0xf]  ;;  %v4127_v28 = vor.u32 %v4977_v13, %v4126_v12  ;;  %v1692_v39 = vpop.f32.mrf.mxu3  ;;  %v3568_v56 = vld [vmem:[#allocation2 + $0x2b8] sm:$0xf0]  ;;  %v3315_v59 = vor.u32 %v4771_v50, %v3312_v51 }
  0xc4   :  { %1932 = vmatpush.bf16.msrb.mxu2 %v4047_v29  ;;  %v3347_v29 = vor.u32 %v4779_v14, %v3344_v16  ;;  %v3731_v41 = vor.u32 %v4875_v26, %v3728_v27  ;;  %v4799_v0 = vld [vmem:[#allocation2 + $0x18c] sm:$0xf]  ;;  %v3555_v14 = vor.u32 %v4831_v3, %v3552_v4  ;;  %v3280_v17 = vld [vmem:[#allocation2 + $0x78] sm:$0xf0] }
  0xc5   :  { %1945 = vmatpush.bf16.msrb.mxu3 %v4175_v35  ;;  %v3328_v35 = vld [vmem:[#allocation2 + $0xd8] sm:$0xf0]  ;;  %v4763_v16 = vld [vmem:[#allocation2 + $0x6c] sm:$0xf] }
  0xc6   :  { %v4859_v26 = vld [vmem:[#allocation2 + $0x36c] sm:$0xf]  ;;  %v3664_v27 = vld [vmem:[#allocation2 + $0x378] sm:$0xf0] }
  0xc7   :  { %1907 = vmatpush.bf16.msrb.mxu0 %v3775_v44  ;;  %1920 = vmatpush.bf16.msrb.mxu1 %v3903_v46  ;;  %v3584_v44 = vld [vmem:[#allocation2 + $0x2d8] sm:$0xf0]  ;;  %v4751_v63 = vld [vmem:[#allocation2 + $0xc] sm:$0xf] }
  0xc8   :  { %1933 = vmatpush.bf16.msrb.mxu2 %v4031_v47  ;;  %v1679_v30 = vpop.f32.mrf.mxu2  ;;  %v3712_v46 = vld [vmem:[#allocation2 + $0x3d8] sm:$0xf0]  ;;  %v3331_v47 = vor.u32 %v4775_v33, %v3328_v35  ;;  %v3587_v49 = vor.u32 %v4839_v43, %v3584_v44  ;;  %v4791_v35 = vld [vmem:[#allocation2 + $0x14c] sm:$0xf] }
  0xc9   :  { %1946 = vmatpush.bf16.msrb.mxu3 %v4159_v52  ;;  %v4803_v52 = vld [vmem:[#allocation2 + $0x1ac] sm:$0xf]  ;;  %v3715_v53 = vor.u32 %v4871_v45, %v3712_v46  ;;  %v3264_v33 = vld [vmem:[#allocation2 + $0x58] sm:$0xf0] }
  0xca   :  { %v3443_v60 = vor.u32 %v4803_v52, %v3440_v54  ;;  %v3392_v39 = vld [vmem:[#allocation2 + $0x158] sm:$0xf0]  ;;  %v4855_v45 = vld [vmem:[#allocation2 + $0x34c] sm:$0xf] }
  0xcb   :  { %1908 = vmatpush.bf16.msrb.mxu0 %v3759_v61  ;;  %1921 = vmatpush.bf16.msrb.mxu1 %v3887_v1  ;;  %v3571_v61 = vor.u32 %v4835_v55, %v3568_v56  ;;  %v3699_v1 = vor.u32 %v4867_v57, %v3696_v58  ;;  %v3648_v46 = vld [vmem:[#allocation2 + $0x358] sm:$0xf0]  ;;  %v3395_v50 = vor.u32 %v4791_v35, %v3392_v39  ;;  %v4755_v52 = vld [vmem:[#allocation2 + $0x2c] sm:$0xf] }
  0xcc   :  { %1934 = vmatpush.bf16.msrb.mxu2 %v4015_v2  ;;  %v3424_v2 = vld [vmem:[#allocation2 + $0x198] sm:$0xf0]  ;;  %v4787_v54 = vld [vmem:[#allocation2 + $0x12c] sm:$0xf]  ;;  %v3651_v56 = vor.u32 %v4855_v45, %v3648_v46 }
  0xcd   :  { %1947 = vmatpush.bf16.msrb.mxu3 %v4143_v10  ;;  %v3680_v10 = vld [vmem:[#allocation2 + $0x398] sm:$0xf0]  ;;  %v3427_v13 = vor.u32 %v4799_v0, %v3424_v2  ;;  %v4819_v58 = vld [vmem:[#allocation2 + $0x22c] sm:$0xf] }
  0xce   :  { %v3683_v21 = vor.u32 %v4863_v5, %v3680_v10  ;;  %v3376_v57 = vld [vmem:[#allocation2 + $0x138] sm:$0xf0]  ;;  %v4783_v3 = vld [vmem:[#allocation2 + $0x10c] sm:$0xf] }
  0xcf   :  { %1909 = vmatpush.bf16.msrb.mxu0 %v3743_v18  ;;  %1922 = vmatpush.bf16.msrb.mxu1 %v3871_v23  ;;  %v1703_v12 = vpop.f32.mrf.mxu0  ;;  %v4795_v18 = vld [vmem:[#allocation2 + $0x16c] sm:$0xf]  ;;  %v1716_v20 = vpop.f32.mrf.mxu1  ;;  %v3232_v0 = vld [vmem:[#allocation2 + $0x18] sm:$0xf0] }
  0xd0   :  { %1935 = vmatpush.bf16.msrb.mxu2 %v3999_v24  ;;  %v1704_v19 = vadd.f32 %v1703_v12, %v5349_v7  ;;  %v4827_v23 = vld [vmem:[#allocation2 + $0x26c] sm:$0xf]  ;;  %v3536_v24 = vld [vmem:[#allocation2 + $0x278] sm:$0xf0]  ;;  %v3411_v30 = vor.u32 %v4795_v18, %v3408_v22  ;;  %v3667_v7 = vor.u32 %v4859_v26, %v3664_v27 }
  0xd1   :  { %1948 = vmatpush.bf16.msrb.mxu3 %v4127_v28  ;;  %v3360_v4 = vld [vmem:[#allocation2 + $0x118] sm:$0xf0]  ;;  %v4815_v5 = vld [vmem:[#allocation2 + $0x20c] sm:$0xf] }
  0xd2   :  { %1910 = vmatmul.bf16.vlgmr.msrb.gmra.mxu0 %v5321_v37  ;;  %1923 = vmatmul.bf16.vlgmr.msrb.gmra.mxu1 %v5325_v40  ;;  %v1717_v28 = vadd.f32 %v1716_v20, %v1704_v19  ;;  %v3488_v12 = vld [vmem:[#allocation2 + $0x218] sm:$0xf0]  ;;  %v4939_v19 = vld [vmem:[#allocation2 + $0x5ec] sm:$0xf]  ;;  %v3235_v20 = vor.u32 %v4751_v63, %v3232_v0 }
  0xd3   :  { %1954 = vmatpush.bf16.msra.mxu0 %v3347_v29  ;;  %1967 = vmatpush.bf16.msra.mxu1 %v3475_v31  ;;  %v3283_v29 = vor.u32 %v4763_v16, %v3280_v17  ;;  %v3539_v31 = vor.u32 %v4827_v23, %v3536_v24  ;;  %v4907_v17 = vld [vmem:[#allocation2 + $0x4ec] sm:$0xf]  ;;  %v3856_v18 = vld [vmem:[#allocation2 + $0x4f8] sm:$0xf0]  ;;  %v3363_v24 = vor.u32 %v4783_v3, %v3360_v4 }
  0xd4   :  { %1980 = vmatpush.bf16.msra.mxu2 %v3603_v32  ;;  %1949 = vmatmul.bf16.vlgmr.msrb.gmra.mxu3 %v5323_v38  ;;  %v4759_v32 = vld [vmem:[#allocation2 + $0x4c] sm:$0xf]  ;;  %v4112_v23 = vld [vmem:[#allocation2 + $0x6f8] sm:$0xf0]  ;;  %v3491_v26 = vor.u32 %v4815_v5, %v3488_v12 }
  0xd5   :  { %1993 = vmatpush.bf16.msra.mxu3 %v3731_v41  ;;  %1936 = vmatmul.bf16.vlgmr.msrb.gmra.mxu2 %v5319_v34  ;;  %v4823_v41 = vld [vmem:[#allocation2 + $0x24c] sm:$0xf]  ;;  %v3840_v35 = vld [vmem:[#allocation2 + $0x4d8] sm:$0xf0] }
  0xd6   :  { %v3523_v51 = vor.u32 %v4823_v41, %v3520_v42  ;;  %v4971_v22 = vld [vmem:[#allocation2 + $0x6ec] sm:$0xf]  ;;  %v3968_v39 = vld [vmem:[#allocation2 + $0x5d8] sm:$0xf0] }
  0xd7   :  { %1955 = vmatpush.bf16.msra.mxu0 %v3331_v47  ;;  %1968 = vmatpush.bf16.msra.mxu1 %v3459_v48  ;;  %v1742_v44 = vpop.f32.mrf.mxu3  ;;  %v3267_v47 = vor.u32 %v4759_v32, %v3264_v33  ;;  %v1718_v55 = vpop.f32.mrf.mxu1  ;;  %v5003_v27 = vld [vmem:[#allocation2 + $0x7ec] sm:$0xf]  ;;  %v4115_v32 = vor.u32 %v4971_v22, %v4112_v23  ;;  %v4096_v42 = vld [vmem:[#allocation2 + $0x6d8] sm:$0xf0] }
  0xd8   :  { %1981 = vmatpush.bf16.msra.mxu2 %v3587_v49  ;;  %v1729_v36 = vpop.f32.mrf.mxu2  ;;  %v1705_v49 = vpop.f32.mrf.mxu0  ;;  %v4903_v33 = vld [vmem:[#allocation2 + $0x4cc] sm:$0xf]  ;;  %v4080_v55 = vld [vmem:[#allocation2 + $0x6b8] sm:$0xf0] }
  0xd9   :  { %1994 = vmatpush.bf16.msra.mxu3 %v3715_v53  ;;  %v1730_v43 = vadd.f32 %v1729_v36, %v1717_v28  ;;  %v3248_v53 = vld [vmem:[#allocation2 + $0x38] sm:$0xf0]  ;;  %v4935_v36 = vld [vmem:[#allocation2 + $0x5cc] sm:$0xf]  ;;  %v3843_v45 = vor.u32 %v4903_v33, %v3840_v35 }
  0xda   :  { %v3251_v62 = vor.u32 %v4755_v52, %v3248_v53  ;;  %v4240_v28 = vld [vmem:[#allocation2 + $0x7f8] sm:$0xf0]  ;;  %v4967_v41 = vld [vmem:[#allocation2 + $0x6cc] sm:$0xf]  ;;  %v3971_v46 = vor.u32 %v4935_v36, %v3968_v39 }
  0xdb   :  { %1956 = vmatpush.bf16.msra.mxu0 %v3315_v59  ;;  %1969 = vmatpush.bf16.msra.mxu1 %v3443_v60  ;;  %v5356_v48 = vadd.f32 %v1742_v44, %v1730_v43  ;;  %v3504_v59 = vld [vmem:[#allocation2 + $0x238] sm:$0xf0]  ;;  %v4851_v60 = vld [vmem:[#allocation2 + $0x32c] sm:$0xf] }
  0xdc   :  { %1982 = vmatpush.bf16.msra.mxu2 %v3571_v61  ;;  %v3632_v61 = vld [vmem:[#allocation2 + $0x338] sm:$0xf0]  ;;  %v3507_v2 = vor.u32 %v4819_v58, %v3504_v59  ;;  %v4999_v43 = vld [vmem:[#allocation2 + $0x7cc] sm:$0xf] }
  0xdd   :  { %1995 = vmatpush.bf16.msra.mxu3 %v3699_v1  ;;  %v3379_v1 = vor.u32 %v4787_v54, %v3376_v57  ;;  %v4224_v44 = vld [vmem:[#allocation2 + $0x7d8] sm:$0xf0]  ;;  %v4899_v49 = vld [vmem:[#allocation2 + $0x4ac] sm:$0xf] }
  0xde   :  { %v4227_v52 = vor.u32 %v4999_v43, %v4224_v44  ;;  %v3952_v53 = vld [vmem:[#allocation2 + $0x5b8] sm:$0xf0]  ;;  %v4963_v54 = vld [vmem:[#allocation2 + $0x6ac] sm:$0xf] }
  0xdf   :  { %1957 = vmatpush.bf16.msra.mxu0 %v3299_v11  ;;  %1970 = vmatpush.bf16.msra.mxu1 %v3427_v13  ;;  %v3635_v11 = vor.u32 %v4851_v60, %v3632_v61  ;;  %v4847_v13 = vld [vmem:[#allocation2 + $0x30c] sm:$0xf]  ;;  %v1744_v16 = vpop.f32.mrf.mxu3  ;;  %v4208_v57 = vld [vmem:[#allocation2 + $0x7b8] sm:$0xf0]  ;;  %v4083_v60 = vor.u32 %v4963_v54, %v4080_v55  ;;  %v355_v54 = vperm.slane %v5346_v6, 1 }
  0xe0   :  { %1983 = vmatpush.bf16.msra.mxu2 %v3555_v14  ;;  %v1731_v10 = vpop.f32.mrf.mxu2  ;;  %v3616_v14 = vld [vmem:[#allocation2 + $0x318] sm:$0xf0]  ;;  %v4895_v61 = vld [vmem:[#allocation2 + $0x48c] sm:$0xf]  ;;  %v5036_v6 = vld [vmem:[#allocation4 + $0xec] sm:$0xf0] }
  0xe1   :  { %1996 = vmatpush.bf16.msra.mxu3 %v3683_v21  ;;  %v3984_v21 = vld [vmem:[#allocation2 + $0x5f8] sm:$0xf0]  ;;  %v4991_v3 = vld [vmem:[#allocation2 + $0x78c] sm:$0xf] }
  0xe2   :  { %v3936_v0 = vld [vmem:[#allocation2 + $0x598] sm:$0xf0]  ;;  %v4891_v10 = vld [vmem:[#allocation2 + $0x46c] sm:$0xf] }
  0xe3   :  { %1958 = vmatpush.bf16.msra.mxu0 %v3283_v29  ;;  %1971 = vmatpush.bf16.msra.mxu1 %v3411_v30  ;;  %v3619_v29 = vor.u32 %v4847_v13, %v3616_v14  ;;  %v3859_v30 = vor.u32 %v4907_v17, %v3856_v18  ;;  %v4923_v12 = vld [vmem:[#allocation2 + $0x56c] sm:$0xf]  ;;  %v3920_v16 = vld [vmem:[#allocation2 + $0x578] sm:$0xf0] }
  0xe4   :  { %1984 = vmatpush.bf16.msra.mxu2 %v3539_v31  ;;  %v3987_v31 = vor.u32 %v4939_v19, %v3984_v21  ;;  %v4955_v17 = vld [vmem:[#allocation2 + $0x66c] sm:$0xf]  ;;  %v4048_v18 = vld [vmem:[#allocation2 + $0x678] sm:$0xf0]  ;;  %v3923_v22 = vor.u32 %v4923_v12, %v3920_v16 }
  0xe5   :  { %1997 = vmatpush.bf16.msra.mxu3 %v3667_v7  ;;  %v4243_v7 = vor.u32 %v5003_v27, %v4240_v28  ;;  %v4987_v19 = vld [vmem:[#allocation2 + $0x76c] sm:$0xf]  ;;  %v4051_v23 = vor.u32 %v4955_v17, %v4048_v18  ;;  %v4160_v36 = vld [vmem:[#allocation2 + $0x758] sm:$0xf0] }
  0xe6   :  { %v4919_v27 = vld [vmem:[#allocation2 + $0x54c] sm:$0xf]  ;;  %v3760_v44 = vld [vmem:[#allocation2 + $0x438] sm:$0xf0] }
  0xe7   :  { %1959 = vmatpush.bf16.msra.mxu0 %v3267_v47  ;;  %1972 = vmatpush.bf16.msra.mxu1 %v3395_v50  ;;  %v4099_v47 = vor.u32 %v4967_v41, %v4096_v42  ;;  %v3824_v50 = vld [vmem:[#allocation2 + $0x4b8] sm:$0xf0]  ;;  %v4983_v35 = vld [vmem:[#allocation2 + $0x74c] sm:$0xf] }
  0xe8   :  { %1985 = vmatpush.bf16.msra.mxu2 %v3523_v51  ;;  %v4931_v51 = vld [vmem:[#allocation2 + $0x5ac] sm:$0xf]  ;;  %v3827_v58 = vor.u32 %v4899_v49, %v3824_v50  ;;  %v3888_v49 = vld [vmem:[#allocation2 + $0x538] sm:$0xf0] }
  0xe9   :  { %1998 = vmatpush.bf16.msra.mxu3 %v3651_v56  ;;  %v4995_v56 = vld [vmem:[#allocation2 + $0x7ac] sm:$0xf]  ;;  %v3955_v59 = vor.u32 %v4931_v51, %v3952_v53  ;;  %v4016_v51 = vld [vmem:[#allocation2 + $0x638] sm:$0xf0] }
  0xea   :  { %v4211_v63 = vor.u32 %v4995_v56, %v4208_v57  ;;  %v4883_v43 = vld [vmem:[#allocation2 + $0x42c] sm:$0xf]  ;;  %v4144_v53 = vld [vmem:[#allocation2 + $0x738] sm:$0xf0] }
  0xeb   :  { %1960 = vmatpush.bf16.msra.mxu0 %v3251_v62  ;;  %1973 = vmatpush.bf16.msra.mxu1 %v3379_v1  ;;  %v3808_v62 = vld [vmem:[#allocation2 + $0x498] sm:$0xf0]  ;;  %v4959_v1 = vld [vmem:[#allocation2 + $0x68c] sm:$0xf]  ;;  %v3763_v55 = vor.u32 %v4883_v43, %v3760_v44  ;;  %v5052_v44 = vld [vmem:[#allocation4 + $0x16c] sm:$0xf0] }
  0xec   :  { %1986 = vmatpush.bf16.msra.mxu2 %v3507_v2  ;;  %v4064_v2 = vld [vmem:[#allocation2 + $0x698] sm:$0xf0]  ;;  %v4947_v50 = vld [vmem:[#allocation2 + $0x62c] sm:$0xf] }
  0xed   :  { %1999 = vmatpush.bf16.msra.mxu3 %v3635_v11  ;;  %v4067_v5 = vor.u32 %v4959_v1, %v4064_v2  ;;  %v3792_v11 = vld [vmem:[#allocation2 + $0x478] sm:$0xf0]  ;;  %v4879_v56 = vld [vmem:[#allocation2 + $0x40c] sm:$0xf] }
  0xee   :  { %v3795_v21 = vor.u32 %v4891_v10, %v3792_v11  ;;  %v4975_v1 = vld [vmem:[#allocation2 + $0x70c] sm:$0xf]  ;;  %v5068_v10 = vld [vmem:[#allocation4 + $0x1ec] sm:$0xf0] }
  0xef   :  { %1961 = vmatpush.bf16.msra.mxu0 %v3235_v20  ;;  %1974 = vmatpush.bf16.msra.mxu1 %v3363_v24  ;;  %v5362_v4 = vpop.f32.mrf.mxu0  ;;  %v5364_v13 = vpop.f32.mrf.mxu1  ;;  %v4176_v20 = vld [vmem:[#allocation2 + $0x778] sm:$0xf0]  ;;  %v4887_v24 = vld [vmem:[#allocation2 + $0x44c] sm:$0xf] }
  0xf0   :  { %1987 = vmatpush.bf16.msra.mxu2 %v3491_v26  ;;  %v3776_v26 = vld [vmem:[#allocation2 + $0x458] sm:$0xf0] }
  0xf1   :  { %2000 = vmatpush.bf16.msra.mxu3 %v3619_v29  ;;  %v4179_v29 = vor.u32 %v4987_v19, %v4176_v20  ;;  %v4342_v19 = vld [vmem:[#allocation4 + $0xc0] sm:$0xf]  ;;  %v5032_v20 = vld [vmem:[#allocation4 + $0xcc] sm:$0xf0] }
  0xf2   :  { %1962 = vmatmul.bf16.vlgmr.msra.gmra.mxu0 %v5291_v9  ;;  %1975 = vmatmul.bf16.vlgmr.msra.gmra.mxu1 %v5304_v25  ;;  %v4192_v9 = vld [vmem:[#allocation2 + $0x798] sm:$0xf0] }
  0xf3   :  { %2006 = vmatpush.bf16.msrb.mxu0 %v3859_v30  ;;  %2019 = vmatpush.bf16.msrb.mxu1 %v3987_v31  ;;  %v4195_v14 = vor.u32 %v4991_v3, %v4192_v9  ;;  %v3904_v30 = vld [vmem:[#allocation2 + $0x558] sm:$0xf0]  ;;  %v4951_v31 = vld [vmem:[#allocation2 + $0x64c] sm:$0xf]  ;;  %v4358_v9 = vld [vmem:[#allocation4 + $0xe0] sm:$0xf] }
  0xf4   :  { %2032 = vmatpush.bf16.msrb.mxu2 %v4115_v32  ;;  %2001 = vmatmul.bf16.vlgmr.msra.gmra.mxu3 %v5296_v15  ;;  %v3811_v15 = vor.u32 %v4895_v61, %v3808_v62  ;;  %v4032_v32 = vld [vmem:[#allocation2 + $0x658] sm:$0xf0]  ;;  %v3907_v41 = vor.u32 %v4919_v27, %v3904_v30  ;;  %v4359_v16 = vor.u32 %v5036_v6, %v4358_v9  ;;  %v5028_v27 = vld [vmem:[#allocation4 + $0xac] sm:$0xf0] }
  0xf5   :  { %2045 = vmatpush.bf16.msrb.mxu3 %v4243_v7  ;;  %1988 = vmatmul.bf16.vlgmr.msra.gmra.mxu2 %v5289_v8  ;;  %v4927_v8 = vld [vmem:[#allocation2 + $0x58c] sm:$0xf]  ;;  %v3779_v7 = vor.u32 %v4887_v24, %v3776_v26  ;;  %v4035_v42 = vor.u32 %v4951_v31, %v4032_v32  ;;  %v3872_v61 = vld [vmem:[#allocation2 + $0x518] sm:$0xf0]  ;;  %v4326_v26 = vld [vmem:[#allocation4 + $0xa0] sm:$0xf] }
  0xf6   :  { %v3939_v25 = vor.u32 %v4927_v8, %v3936_v0  ;;  %v4000_v0 = vld [vmem:[#allocation2 + $0x618] sm:$0xf0]  ;;  %v4327_v30 = vor.u32 %v5028_v27, %v4326_v26  ;;  %v5008_v9 = vld [vmem:[#allocation4 + $0xc] sm:$0xf0]  ;;  %v4472_v26 = vld [vmem:[#allocation4 + $0x1d0] sm:$0xf0] }
  0xf7   :  { %2007 = vmatpush.bf16.msrb.mxu0 %v3843_v45  ;;  %2020 = vmatpush.bf16.msrb.mxu1 %v3971_v46  ;;  %v5368_v33 = vpop.f32.mrf.mxu3  ;;  %v1757_v39 = vpop.f32.mrf.mxu0  ;;  %v4915_v45 = vld [vmem:[#allocation2 + $0x52c] sm:$0xf]  ;;  %v4128_v3 = vld [vmem:[#allocation2 + $0x718] sm:$0xf0] }
  0xf8   :  { %2033 = vmatpush.bf16.msrb.mxu2 %v4099_v47  ;;  %v5366_v28 = vpop.f32.mrf.mxu2  ;;  %v1770_v46 = vpop.f32.mrf.mxu1  ;;  %v4163_v47 = vor.u32 %v4983_v35, %v4160_v36  ;;  %v3891_v57 = vor.u32 %v4915_v45, %v3888_v49  ;;  %v5024_v35 = vld [vmem:[#allocation4 + $0x8c] sm:$0xf0]  ;;  %v4438_v36 = vld [vmem:[#allocation4 + $0x180] sm:$0xf] }
  0xf9   :  { %2046 = vmatpush.bf16.msrb.mxu3 %v4227_v52  ;;  %v4979_v52 = vld [vmem:[#allocation2 + $0x72c] sm:$0xf]  ;;  %v5016_v49 = vld [vmem:[#allocation4 + $0x4c] sm:$0xf0] }
  0xfa   :  { %v4147_v8 = vor.u32 %v4979_v52, %v4144_v53  ;;  %v5048_v52 = vld [vmem:[#allocation4 + $0x14c] sm:$0xf0] }
  0xfb   :  { %2008 = vmatpush.bf16.msrb.mxu0 %v3827_v58  ;;  %2021 = vmatpush.bf16.msrb.mxu1 %v3955_v59  ;;  %v4019_v58 = vor.u32 %v4947_v50, %v4016_v51  ;;  %v3744_v59 = vld [vmem:[#allocation2 + $0x418] sm:$0xf0]  ;;  %v4406_v51 = vld [vmem:[#allocation4 + $0x140] sm:$0xf] }
  0xfc   :  { %2034 = vmatpush.bf16.msrb.mxu2 %v4083_v60  ;;  %v4911_v60 = vld [vmem:[#allocation2 + $0x50c] sm:$0xf] }
  0xfd   :  { %2047 = vmatpush.bf16.msrb.mxu3 %v4211_v63  ;;  %v4943_v63 = vld [vmem:[#allocation2 + $0x60c] sm:$0xf]  ;;  %v3875_v11 = vor.u32 %v4911_v60, %v3872_v61  ;;  %v4614_v61 = vld [vmem:[#allocation4 + $0x2e0] sm:$0xf] }
  0xfe   :  { %v4003_v12 = vor.u32 %v4943_v63, %v4000_v0  ;;  %v5044_v63 = vld [vmem:[#allocation4 + $0x12c] sm:$0xf0] }
  0xff   :  { %2009 = vmatpush.bf16.msrb.mxu0 %v3811_v15  ;;  %2022 = vmatpush.bf16.msrb.mxu1 %v3939_v25  ;;  %v1796_v2 = vpop.f32.mrf.mxu3  ;;  %v1756_v15 = vadd.f32 %v5362_v4, %v355_v54  ;;  %v3747_v25 = vor.u32 %v4879_v56, %v3744_v59  ;;  %v4343_v4 = vor.u32 %v5032_v20, %v4342_v19  ;;  %v4262_v56 = vld [vmem:[#allocation4 + $0x20] sm:$0xf]  ;;  %v5012_v59 = vld [vmem:[#allocation4 + $0x2c] sm:$0xf0]  ;;  %v4616_v19 = vld [vmem:[#allocation4 + $0x2f0] sm:$0xf0] }
 0x100   :  { %2035 = vmatpush.bf16.msrb.mxu2 %v4067_v5  ;;  %v1783_v62 = vpop.f32.mrf.mxu2  ;;  %v4486_v5 = vld [vmem:[#allocation4 + $0x1e0] sm:$0xf]  ;;  %v4263_v2 = vor.u32 %v5012_v59, %v4262_v56  ;;  %v5082_v56 = vld [vmem:[#allocation4 + $0x264] sm:$0xf] }
 0x101   :  { %2048 = vmatpush.bf16.msrb.mxu3 %v4195_v14  ;;  %v4131_v14 = vor.u32 %v4975_v1, %v4128_v3  ;;  %v4487_v17 = vor.u32 %v5068_v10, %v4486_v5  ;;  %v1769_v18 = vadd.f32 %v5364_v13, %v1756_v15  ;;  %v4454_v13 = vld [vmem:[#allocation4 + $0x1a0] sm:$0xf]  ;;  %v5100_v62 = vld [vmem:[#allocation4 + $0x2ec] sm:$0xf0] }
 0x102   :  { %v4615_v0 = vor.u32 %v5100_v62, %v4614_v61  ;;  %v4246_v3 = vld [vmem:[#allocation4] sm:$0xf]  ;;  %v5096_v10 = vld [vmem:[#allocation4 + $0x2cc] sm:$0xf0] }
 0x103   :  { %2010 = vmatpush.bf16.msrb.mxu0 %v3795_v21  ;;  %2023 = vmatpush.bf16.msrb.mxu1 %v3923_v22  ;;  %v4470_v21 = vld [vmem:[#allocation4 + $0x1c0] sm:$0xf]  ;;  %v5064_v22 = vld [vmem:[#allocation4 + $0x1cc] sm:$0xf0]  ;;  %v1782_v24 = vadd.f32 %v5366_v28, %v1769_v18  ;;  %v5098_v18 = vld [vmem:[#allocation4 + $0x2e4] sm:$0xf] }
 0x104   :  { %2036 = vmatpush.bf16.msrb.mxu2 %v4051_v23  ;;  %v4471_v23 = vor.u32 %v5064_v22, %v4470_v21  ;;  %v5056_v28 = vld [vmem:[#allocation4 + $0x18c] sm:$0xf0]  ;;  %v4374_v15 = vld [vmem:[#allocation4 + $0x100] sm:$0xf]  ;;  %v4247_v21 = vor.u32 %v5008_v9, %v4246_v3  ;;  %v2058_v22 = vmax.f32 %v5356_v48, 0.0  ;;  %v4619_v27 = vor.u32 %v5098_v18, %v4616_v19 }
 0x105   :  { %2049 = vmatpush.bf16.msrb.mxu3 %v4179_v29  ;;  %v5060_v29 = vld [vmem:[#allocation4 + $0x1ac] sm:$0xf0]  ;;  %v1795_v31 = vadd.f32 %v5368_v33, %v1782_v24  ;;  %v4598_v5 = vld [vmem:[#allocation4 + $0x2c0] sm:$0xf]  ;;  %v5062_v24 = vld [vmem:[#allocation4 + $0x1c4] sm:$0xf] }
 0x106   :  { %v4455_v32 = vor.u32 %v5060_v29, %v4454_v13  ;;  %v5094_v13 = vld [vmem:[#allocation4 + $0x2c4] sm:$0xf]  ;;  %v4600_v29 = vld [vmem:[#allocation4 + $0x2d0] sm:$0xf0]  ;;  %v4534_v59 = vld [vmem:[#allocation4 + $0x240] sm:$0xf] }
 0x107   :  { %2011 = vmatpush.bf16.msrb.mxu0 %v3779_v7  ;;  %2024 = vmatpush.bf16.msrb.mxu1 %v3907_v41  ;;  %v5020_v41 = vld [vmem:[#allocation4 + $0x6c] sm:$0xf0]  ;;  %v5058_v48 = vld [vmem:[#allocation4 + $0x1a4] sm:$0xf]  ;;  %v4536_v3 = vld [vmem:[#allocation4 + $0x250] sm:$0xf0] }
 0x108   :  { %2037 = vmatpush.bf16.msrb.mxu2 %v4035_v42  ;;  %v4518_v9 = vld [vmem:[#allocation4 + $0x220] sm:$0xf]  ;;  %v4520_v18 = vld [vmem:[#allocation4 + $0x230] sm:$0xf0] }
 0x109   :  { %2050 = vmatpush.bf16.msrb.mxu3 %v4163_v47  ;;  %v4278_v47 = vld [vmem:[#allocation4 + $0x40] sm:$0xf] }
 0x10a   :  { %v4279_v54 = vor.u32 %v5016_v49, %v4278_v47  ;;  %v5086_v47 = vld [vmem:[#allocation4 + $0x284] sm:$0xf]  ;;  %v4568_v49 = vld [vmem:[#allocation4 + $0x290] sm:$0xf0]  ;;  %v4502_v19 = vld [vmem:[#allocation4 + $0x200] sm:$0xf] }
 0x10b   :  { %2012 = vmatpush.bf16.msrb.mxu0 %v3763_v55  ;;  %2025 = vmatpush.bf16.msrb.mxu1 %v3891_v57 }
 0x10c   :  { %2038 = vmatpush.bf16.msrb.mxu2 %v4019_v58  ;;  %v4407_v58 = vor.u32 %v5048_v52, %v4406_v51  ;;  %v5050_v52 = vld [vmem:[#allocation4 + $0x164] sm:$0xf] }
 0x10d   :  { %2051 = vmatpush.bf16.msrb.mxu3 %v4147_v8  ;;  %v4390_v8 = vld [vmem:[#allocation4 + $0x120] sm:$0xf] }
 0x10e   :  { %v4391_v6 = vor.u32 %v5044_v63, %v4390_v8  ;;  %v5046_v8 = vld [vmem:[#allocation4 + $0x144] sm:$0xf]  ;;  %v4408_v63 = vld [vmem:[#allocation4 + $0x150] sm:$0xf0] }
 0x10f   :  { %2013 = vmatpush.bf16.msrb.mxu0 %v3747_v25  ;;  %2026 = vmatpush.bf16.msrb.mxu1 %v3875_v11  ;;  %v1807_v39 = vpop.f32.mrf.mxu0  ;;  %v1820_v43 = vpop.f32.mrf.mxu1  ;;  %v5040_v11 = vld [vmem:[#allocation4 + $0x10c] sm:$0xf0] }
 0x110   :  { %2039 = vmatpush.bf16.msrb.mxu2 %v4003_v12  ;;  %v1808_v42 = vadd.f32 %v1807_v39, %v1795_v31  ;;  %v5066_v12 = vld [vmem:[#allocation4 + $0x1e4] sm:$0xf]  ;;  %v5092_v31 = vld [vmem:[#allocation4 + $0x2ac] sm:$0xf0]  ;;  %v4566_v39 = vld [vmem:[#allocation4 + $0x280] sm:$0xf] }
 0x111   :  { %2052 = vmatpush.bf16.msrb.mxu3 %v4131_v14  ;;  %v4488_v14 = vld [vmem:[#allocation4 + $0x1f0] sm:$0xf0] }
 0x112   :  { %2014 = vmatmul.bf16.vlgmr.msrb.gmra.mxu0 %v5321_v37  ;;  %2027 = vmatmul.bf16.vlgmr.msrb.gmra.mxu1 %v5325_v40  ;;  %v4310_v37 = vld [vmem:[#allocation4 + $0x80] sm:$0xf]  ;;  %v4439_v40 = vor.u32 %v5056_v28, %v4438_v36  ;;  %v1821_v46 = vadd.f32 %v1820_v43, %v1808_v42  ;;  %v4475_v36 = vor.u32 %v5062_v24, %v4472_v26  ;;  %v4456_v28 = vld [vmem:[#allocation4 + $0x1b0] sm:$0xf0]  ;;  %v5038_v24 = vld [vmem:[#allocation4 + $0x104] sm:$0xf] }
 0x113   :  { %2681 = vmatpush.bf16.msra.mxu0 %v4359_v16  ;;  %2694 = vmatpush.bf16.msra.mxu1 %v4487_v17  ;;  %v4311_v7 = vor.u32 %v5024_v35, %v4310_v37  ;;  %v4599_v17 = vor.u32 %v5096_v10, %v4598_v5  ;;  %v5382_v35 = vpack.c.bf16 %v2058_v22, %v2058_v22  ;;  %v5042_v10 = vld [vmem:[#allocation4 + $0x124] sm:$0xf]  ;;  %v4376_v26 = vld [vmem:[#allocation4 + $0x110] sm:$0xf0] }
 0x114   :  { %2040 = vmatmul.bf16.vlgmr.msrb.gmra.mxu2 %v5319_v34  ;;  %2053 = vmatmul.bf16.vlgmr.msrb.gmra.mxu3 %v5323_v38  ;;  %v4294_v34 = vld [vmem:[#allocation4 + $0x60] sm:$0xf]  ;;  %v4459_v43 = vor.u32 %v5058_v48, %v4456_v28  ;;  %v4411_v5 = vor.u32 %v5046_v8, %v4408_v63  ;;  %v4379_v28 = vor.u32 %v5038_v24, %v4376_v26  ;;  %v5034_v63 = vld [vmem:[#allocation4 + $0xe4] sm:$0xf]  ;;  %v4344_v24 = vld [vmem:[#allocation4 + $0xd0] sm:$0xf0] }
 0x115   :  { %v4422_v38 = vld [vmem:[#allocation4 + $0x160] sm:$0xf]  ;;  %v4295_v45 = vor.u32 %v5020_v41, %v4294_v34  ;;  %2707 = vmatpush.bf16.msra.mxu2 %v4615_v0  ;;  %v5090_v34 = vld [vmem:[#allocation4 + $0x2a4] sm:$0xf]  ;;  %v4584_v41 = vld [vmem:[#allocation4 + $0x2b0] sm:$0xf0] }
 0x116   :  { %v4423_v33 = vor.u32 %v5052_v44, %v4422_v38  ;;  %v5054_v38 = vld [vmem:[#allocation4 + $0x184] sm:$0xf]  ;;  %v4440_v44 = vld [vmem:[#allocation4 + $0x190] sm:$0xf0] }
 0x117   :  { %2682 = vmatpush.bf16.msra.mxu0 %v4343_v4  ;;  %2695 = vmatpush.bf16.msra.mxu1 %v4471_v23  ;;  %v1846_v53 = vpop.f32.mrf.mxu3  ;;  %v1809_v57 = vpop.f32.mrf.mxu0  ;;  %v4375_v4 = vor.u32 %v5040_v11, %v4374_v15  ;;  %v4491_v23 = vor.u32 %v5066_v12, %v4488_v14  ;;  %v4443_v51 = vor.u32 %v5054_v38, %v4440_v44  ;;  %v4392_v11 = vld [vmem:[#allocation4 + $0x130] sm:$0xf0]  ;;  %v5093_v38 = vld [vmem:[#allocation4 + $0x2b4] sm:$0xf0]  ;;  %v2162_v8 = vld [vmem:[#allocation4 + $0x300] sm:$0xff] }
 0x118   :  { %v1833_v50 = vpop.f32.mrf.mxu2  ;;  %v1822_v60 = vpop.f32.mrf.mxu1  ;;  %v4395_v22 = vor.u32 %v5042_v10, %v4392_v11 }
 0x119   :  { %v1834_v55 = vadd.f32 %v1833_v50, %v1821_v46  ;;  %2708 = vmatpush.bf16.msra.mxu2 %v4599_v17  ;;  %v4550_v46 = vld [vmem:[#allocation4 + $0x260] sm:$0xf]  ;;  %v5080_v60 = vld [vmem:[#allocation4 + $0x24c] sm:$0xf0] }
 0x11a   :  { %v4535_v61 = vor.u32 %v5080_v60, %v4534_v59 }
 0x11b   :  { %2683 = vmatpush.bf16.msra.mxu0 %v4327_v30  ;;  %2696 = vmatpush.bf16.msra.mxu1 %v4455_v32  ;;  %v1847_v1 = vadd.f32 %v1846_v53, %v1834_v55  ;;  %v4582_v30 = vld [vmem:[#allocation4 + $0x2a0] sm:$0xf]  ;;  %v4424_v53 = vld [vmem:[#allocation4 + $0x170] sm:$0xf0]  ;;  %v4571_v55 = vor.u32 %v5086_v47, %v4568_v49 }
 0x11c   :  { %v4583_v37 = vor.u32 %v5092_v31, %v4582_v30  ;;  %v4427_v62 = vor.u32 %v5050_v52, %v4424_v53  ;;  %v5070_v31 = vld [vmem:[#allocation4 + $0x204] sm:$0xf] }
 0x11d   :  { %v2059_v20 = vmax.f32 %v1847_v1, 0.0  ;;  %v5078_v1 = vld [vmem:[#allocation4 + $0x244] sm:$0xf] }
 0x11e   :  { %2709 = vmatpush.bf16.msra.mxu2 %v4583_v37  ;;  %v4539_v14 = vor.u32 %v5078_v1, %v4536_v3  ;;  %v4504_v37 = vld [vmem:[#allocation4 + $0x210] sm:$0xf0]  ;;  %v4526_v1 = vld [vmem:[#allocation4 + $0x228] sm:$0xf]  ;;  %v2464_v3 = vunpack.c.l.b16 %v2162_v8 }
 0x11f   :  { %2684 = vmatpush.bf16.msra.mxu0 %v4311_v7  ;;  %2697 = vmatpush.bf16.msra.mxu1 %v4439_v40  ;;  %v1848_v16 = vpop.f32.mrf.mxu3  ;;  %v5380_v32 = vpack.c.bf16 %v2059_v20, %v2059_v20  ;;  %v4603_v7 = vor.u32 %v5094_v13, %v4600_v29  ;;  %v5088_v40 = vld [vmem:[#allocation4 + $0x28c] sm:$0xf0]  ;;  %v5101_v29 = vld [vmem:[#allocation4 + $0x2f4] sm:$0xf0] }
 0x120   :  { %v1835_v25 = vpop.f32.mrf.mxu2  ;;  %v4567_v42 = vor.u32 %v5088_v40, %v4566_v39  ;;  %v5074_v16 = vld [vmem:[#allocation4 + $0x224] sm:$0xf]  ;;  %v5072_v20 = vld [vmem:[#allocation4 + $0x20c] sm:$0xf0]  ;;  %v4507_v39 = vor.u32 %v5070_v31, %v4504_v37  ;;  %v4606_v40 = vld [vmem:[#allocation4 + $0x2c8] sm:$0xf]  ;;  %v2564_v11 = vpack.c.b16 %v2464_v3, %v2464_v3 }
 0x121   :  { %v4523_v13 = vor.u32 %v5074_v16, %v4520_v18  ;;  %v4510_v18 = vld [vmem:[#allocation4 + $0x208] sm:$0xf]  ;;  %v5017_v3 = vld [vmem:[#allocation4 + $0x54] sm:$0xf0] }
 0x122   :  { %2710 = vmatpush.bf16.msra.mxu2 %v4567_v42 }
 0x123   :  { %2685 = vmatpush.bf16.msra.mxu0 %v4295_v45  ;;  %2698 = vmatpush.bf16.msra.mxu1 %v4423_v33  ;;  %v4587_v45 = vor.u32 %v5090_v34, %v4584_v41  ;;  %v5084_v33 = vld [vmem:[#allocation4 + $0x26c] sm:$0xf0]  ;;  %v5097_v34 = vld [vmem:[#allocation4 + $0x2d4] sm:$0xf0] }
 0x124   :  { %v4551_v50 = vor.u32 %v5084_v33, %v4550_v46  ;;  %v4607_v42 = vor.u32 %v5097_v34, %v4606_v40  ;;  %v4574_v46 = vld [vmem:[#allocation4 + $0x288] sm:$0xf]  ;;  %v5089_v33 = vld [vmem:[#allocation4 + $0x294] sm:$0xf0] }
 0x125   :  { %v4575_v49 = vor.u32 %v5089_v33, %v4574_v46  ;;  %v5029_v40 = vld [vmem:[#allocation4 + $0xb4] sm:$0xf0] }
 0x126   :  { %2711 = vmatpush.bf16.msra.mxu2 %v4551_v50  ;;  %v4558_v50 = vld [vmem:[#allocation4 + $0x268] sm:$0xf]  ;;  %v5025_v46 = vld [vmem:[#allocation4 + $0x94] sm:$0xf0] }
 0x127   :  { %2686 = vmatpush.bf16.msra.mxu0 %v4279_v54  ;;  %2699 = vmatpush.bf16.msra.mxu1 %v4407_v58  ;;  %v4552_v58 = vld [vmem:[#allocation4 + $0x270] sm:$0xf0] }
 0x128   :  { %v4555_v0 = vor.u32 %v5082_v56, %v4552_v58  ;;  %v5081_v58 = vld [vmem:[#allocation4 + $0x254] sm:$0xf0] }
 0x12a   :  { %2712 = vmatpush.bf16.msra.mxu2 %v4535_v61 }
 0x12b   :  { %2687 = vmatpush.bf16.msra.mxu0 %v4263_v2  ;;  %2700 = vmatpush.bf16.msra.mxu1 %v4391_v6  ;;  %v5076_v6 = vld [vmem:[#allocation4 + $0x22c] sm:$0xf0] }
 0x12c   :  { %v4519_v25 = vor.u32 %v5076_v6, %v4518_v9  ;;  %v2465_v9 = vunpack.c.h.b16 %v2162_v8 }
 0x12e   :  { %2713 = vmatpush.bf16.msra.mxu2 %v4519_v25  ;;  %v4366_v25 = vld [vmem:[#allocation4 + $0xe8] sm:$0xf] }
 0x12f   :  { %2688 = vmatpush.bf16.msra.mxu0 %v4247_v21  ;;  %2701 = vmatpush.bf16.msra.mxu1 %v4375_v4  ;;  %v1859_v54 = vpop.f32.mrf.mxu0  ;;  %v1872_v57 = vpop.f32.mrf.mxu1  ;;  %v4503_v21 = vor.u32 %v5072_v20, %v4502_v19  ;;  %v5389_v4 = vld [vmem:[%s5520_s2] sm:$0xf]  ;;  %v5073_v19 = vld [vmem:[#allocation4 + $0x214] sm:$0xf0]  ;;  %v2670_v20 = vsel %vm2668_vm0, %v2564_v11, 0 }
 0x130   :  { %2727 = vmatpush.bf16.msra.mxu3 %v2670_v20  ;;  %v4511_v31 = vor.u32 %v5073_v19, %v4510_v18  ;;  %v4264_v11 = vld [vmem:[#allocation4 + $0x30] sm:$0xf0]  ;;  %v5013_v18 = vld [vmem:[#allocation4 + $0x34] sm:$0xf0]  ;;  %v5023_v20 = vld [vmem:[#allocation4 + $0x8c] sm:$0xf] }
 0x132   :  { %2689 = vmatmul.bf16.vlgmr.msra.gmra.mxu0 %v5382_v35  ;;  %2702 = vmatmul.bf16.vlgmr.msra.gmra.mxu1 %v5380_v32 }
 0x133   :  { %2746 = vmatpush.bf16.msrb.mxu0 %v4491_v23  ;;  %2759 = vmatpush.bf16.msrb.mxu1 %v4619_v27  ;;  %v356_v23 = vperm.slane %v5389_v4, 2  ;;  %v4622_v27 = vld [vmem:[#allocation4 + $0x2e8] sm:$0xf] }
 0x134   :  { %2714 = vmatpush.bf16.msra.mxu2 %v4503_v21 }
 0x135   :  { %v1860_v48 = vadd.f32 %v1859_v54, %v356_v23  ;;  %v5030_v23 = vld [vmem:[#allocation4 + $0xc4] sm:$0xf] }
 0x137   :  { %2747 = vmatpush.bf16.msrb.mxu0 %v4475_v36  ;;  %2760 = vmatpush.bf16.msrb.mxu1 %v4603_v7  ;;  %v1898_v15 = vpop.f32.mrf.mxu3  ;;  %v1861_v12 = vpop.f32.mrf.mxu0  ;;  %v4623_v7 = vor.u32 %v5101_v29, %v4622_v27  ;;  %v1873_v41 = vadd.f32 %v1872_v57, %v1860_v48  ;;  %v4542_v57 = vld [vmem:[#allocation4 + $0x248] sm:$0xf]  ;;  %v4328_v48 = vld [vmem:[#allocation4 + $0xb0] sm:$0xf0] }
 0x138   :  { %v1885_v2 = vpop.f32.mrf.mxu2  ;;  %v1874_v17 = vpop.f32.mrf.mxu1  ;;  %v4350_v27 = vld [vmem:[#allocation4 + $0xc8] sm:$0xf] }
 0x139   :  { %v1886_v44 = vadd.f32 %v1885_v2, %v1873_v41  ;;  %v5077_v2 = vld [vmem:[#allocation4 + $0x234] sm:$0xf0] }
 0x13a   :  { %v4527_v17 = vor.u32 %v5077_v2, %v4526_v1  ;;  %v4286_v2 = vld [vmem:[#allocation4 + $0x48] sm:$0xf] }
 0x13b   :  { %2748 = vmatpush.bf16.msrb.mxu0 %v4459_v43  ;;  %2761 = vmatpush.bf16.msrb.mxu1 %v4587_v45  ;;  %v4590_v43 = vld [vmem:[#allocation4 + $0x2a8] sm:$0xf]  ;;  %v1899_v47 = vadd.f32 %v1898_v15, %v1886_v44 }
 0x13c   :  { %v4591_v45 = vor.u32 %v5093_v38, %v4590_v43  ;;  %v4312_v43 = vld [vmem:[#allocation4 + $0x90] sm:$0xf0] }
 0x13f   :  { %2749 = vmatpush.bf16.msrb.mxu0 %v4443_v51  ;;  %2762 = vmatpush.bf16.msrb.mxu1 %v4571_v55  ;;  %v1900_v36 = vpop.f32.mrf.mxu3  ;;  %v5085_v51 = vld [vmem:[#allocation4 + $0x274] sm:$0xf0] }
 0x140   :  { %v1887_v30 = vpop.f32.mrf.mxu2  ;;  %v4559_v55 = vor.u32 %v5085_v51, %v4558_v50  ;;  %v5026_v36 = vld [vmem:[#allocation4 + $0xa4] sm:$0xf]  ;;  %v5035_v50 = vld [vmem:[#allocation4 + $0xec] sm:$0xf]  ;;  %v4368_v51 = vld [vmem:[#allocation4 + $0xf8] sm:$0xf0] }
 0x141   :  { %v4347_v30 = vor.u32 %v5030_v23, %v4344_v24  ;;  %v4331_v41 = vor.u32 %v5026_v36, %v4328_v48  ;;  %v5009_v36 = vld [vmem:[#allocation4 + $0x14] sm:$0xf0] }
 0x143   :  { %2750 = vmatpush.bf16.msrb.mxu0 %v4427_v62  ;;  %2763 = vmatpush.bf16.msrb.mxu1 %v4555_v0  ;;  %v4543_v62 = vor.u32 %v5081_v58, %v4542_v57  ;;  %v4360_v0 = vld [vmem:[#allocation4 + $0xf0] sm:$0xf0]  ;;  %v5021_v57 = vld [vmem:[#allocation4 + $0x74] sm:$0xf0] }
 0x144   :  { %v4363_v12 = vor.u32 %v5034_v63, %v4360_v0  ;;  %v5014_v63 = vld [vmem:[#allocation4 + $0x44] sm:$0xf]  ;;  %v4280_v0 = vld [vmem:[#allocation4 + $0x50] sm:$0xf0] }
 0x145   :  { %v4283_v1 = vor.u32 %v5014_v63, %v4280_v0  ;;  %v5069_v63 = vld [vmem:[#allocation4 + $0x1f4] sm:$0xf0]  ;;  %v5067_v0 = vld [vmem:[#allocation4 + $0x1ec] sm:$0xf] }
 0x146   :  { %2733 = vmatpush.bf16.msrb.mxu3 %v4363_v12 }
 0x147   :  { %2751 = vmatpush.bf16.msrb.mxu0 %v4411_v5  ;;  %2764 = vmatpush.bf16.msrb.mxu1 %v4539_v14  ;;  %v5037_v5 = vld [vmem:[#allocation4 + $0xf4] sm:$0xf0]  ;;  %v2565_v14 = vpack.c.b16 %v2465_v9, %v2465_v9  ;;  %v4287_v9 = vor.u32 %v5017_v3, %v4286_v2 }
 0x149   :  { %v2673_v21 = vsel %vm2668_vm0, %v2565_v14, 0 }
 0x14a   :  { %2779 = vmatpush.bf16.msrb.mxu2 %v2673_v21  ;;  %2734 = vmatpush.bf16.msrb.mxu3 %v4347_v30  ;;  %v4320_v21 = vld [vmem:[#allocation4 + $0x98] sm:$0xf0]  ;;  %v4248_v30 = vld [vmem:[#allocation4 + $0x10] sm:$0xf0] }
 0x14b   :  { %2752 = vmatpush.bf16.msrb.mxu0 %v4395_v22  ;;  %2765 = vmatpush.bf16.msrb.mxu1 %v4523_v13  ;;  %v4367_v22 = vor.u32 %v5037_v5, %v4366_v25  ;;  %v5033_v13 = vld [vmem:[#allocation4 + $0xd4] sm:$0xf0]  ;;  %v4323_v24 = vor.u32 %v5023_v20, %v4320_v21  ;;  %v4464_v20 = vld [vmem:[#allocation4 + $0x1b8] sm:$0xf0] }
 0x14e   :  { %2735 = vmatpush.bf16.msrb.mxu3 %v4331_v41 }
 0x14f   :  { %2753 = vmatpush.bf16.msrb.mxu0 %v4379_v28  ;;  %2766 = vmatpush.bf16.msrb.mxu1 %v4507_v39  ;;  %v1911_v52 = vpop.f32.mrf.mxu0  ;;  %v1924_v54 = vpop.f32.mrf.mxu1  ;;  %v4351_v28 = vor.u32 %v5033_v13, %v4350_v27  ;;  %v4334_v39 = vld [vmem:[#allocation4 + $0xa8] sm:$0xf] }
 0x150   :  { %v1912_v53 = vadd.f32 %v1911_v52, %v1899_v47  ;;  %v4335_v44 = vor.u32 %v5029_v40, %v4334_v39  ;;  %v4371_v52 = vor.u32 %v5035_v50, %v4368_v51  ;;  %v4304_v39 = vld [vmem:[#allocation4 + $0x78] sm:$0xf0] }
 0x151   :  { %v4256_v50 = vld [vmem:[#allocation4 + $0x18] sm:$0xf0] }
 0x152   :  { %2754 = vmatmul.bf16.vlgmr.msrb.gmra.mxu0 %v5380_v32  ;;  %v1925_v56 = vadd.f32 %v1924_v54, %v1912_v53  ;;  %v5018_v53 = vld [vmem:[#allocation4 + $0x64] sm:$0xf]  ;;  %v4296_v54 = vld [vmem:[#allocation4 + $0x70] sm:$0xf0] }
 0x153   :  { %2811 = vmatpush.bf16.msra.mxu0 %v4623_v7  ;;  %v5399_v7 = vld [vmem:[#allocation4 + $0x308] sm:$0xff] }
 0x154   :  { %v2466_v34 = vunpack.c.l.b16 %v5399_v7  ;;  %v2467_v12 = vunpack.c.h.b16 %v5399_v7  ;;  %v5019_v7 = vld [vmem:[#allocation4 + $0x6c] sm:$0xf] }
 0x156   :  { %v2566_v38 = vpack.c.b16 %v2466_v34, %v2466_v34  ;;  %v4307_v34 = vor.u32 %v5019_v7, %v4304_v39  ;;  %v4432_v7 = vld [vmem:[#allocation4 + $0x178] sm:$0xf0] }
 0x157   :  { %2812 = vmatpush.bf16.msra.mxu0 %v4607_v42  ;;  %v1950_v61 = vpop.f32.mrf.mxu3  ;;  %v1913_v15 = vpop.f32.mrf.mxu0  ;;  %v5022_v42 = vld [vmem:[#allocation4 + $0x84] sm:$0xf] }
 0x158   :  { %v1937_v59 = vpop.f32.mrf.mxu2  ;;  %v1926_v10 = vpop.f32.mrf.mxu1  ;;  %v2676_v33 = vsel %vm2668_vm0, %v2566_v38, 0  ;;  %v4315_v47 = vor.u32 %v5022_v42, %v4312_v43  ;;  %v4336_v15 = vld [vmem:[#allocation4 + $0xb8] sm:$0xf0]  ;;  %v5015_v43 = vld [vmem:[#allocation4 + $0x4c] sm:$0xf] }
 0x159   :  { %v1938_v60 = vadd.f32 %v1937_v59, %v1925_v56  ;;  %2831 = vmatpush.bf16.msra.mxu1 %v2676_v33  ;;  %v4302_v56 = vld [vmem:[#allocation4 + $0x68] sm:$0xf]  ;;  %v5031_v59 = vld [vmem:[#allocation4 + $0xcc] sm:$0xf]  ;;  %v5010_v10 = vld [vmem:[#allocation4 + $0x24] sm:$0xf] }
 0x15a   :  { %2736 = vmatpush.bf16.msrb.mxu3 %v4315_v47  ;;  %v4303_v58 = vor.u32 %v5021_v57, %v4302_v56  ;;  %v4288_v38 = vld [vmem:[#allocation4 + $0x58] sm:$0xf0] }
 0x15b   :  { %2813 = vmatpush.bf16.msra.mxu0 %v4591_v45  ;;  %v1951_v6 = vadd.f32 %v1950_v61, %v1938_v60  ;;  %v4318_v45 = vld [vmem:[#allocation4 + $0x88] sm:$0xf]  ;;  %v4352_v60 = vld [vmem:[#allocation4 + $0xd8] sm:$0xf0] }
 0x15c   :  { %v4272_v33 = vld [vmem:[#allocation4 + $0x38] sm:$0xf0] }
 0x15d   :  { %v2060_v16 = vmax.f32 %v1951_v6, 0.0  ;;  %v5027_v6 = vld [vmem:[#allocation4 + $0xac] sm:$0xf] }
 0x15e   :  { %v4339_v25 = vor.u32 %v5027_v6, %v4336_v15  ;;  %v4478_v15 = vld [vmem:[#allocation4 + $0x1c8] sm:$0xf] }
 0x15f   :  { %2814 = vmatpush.bf16.msra.mxu0 %v4575_v49  ;;  %v5395_v26 = vpack.c.bf16 %v2060_v16, %v2060_v16  ;;  %v1952_v37 = vpop.f32.mrf.mxu3  ;;  %v4319_v49 = vor.u32 %v5025_v46, %v4318_v45  ;;  %v4267_v16 = vor.u32 %v5010_v10, %v4264_v11  ;;  %v5011_v46 = vld [vmem:[#allocation4 + $0x2c] sm:$0xf]  ;;  %v4480_v11 = vld [vmem:[#allocation4 + $0x1d8] sm:$0xf0] }
 0x160   :  { %v1939_v29 = vpop.f32.mrf.mxu2  ;;  %v4254_v37 = vld [vmem:[#allocation4 + $0x8] sm:$0xf]  ;;  %v4275_v47 = vor.u32 %v5011_v46, %v4272_v33  ;;  %v5063_v10 = vld [vmem:[#allocation4 + $0x1cc] sm:$0xf] }
 0x161   :  { %2715 = vmatmul.bf16.vlgmr.msra.gmra.mxu2 %v5395_v26  ;;  %2767 = vmatmul.bf16.vlgmr.msrb.gmra.mxu1 %v5395_v26  ;;  %v5006_v29 = vld [vmem:[#allocation4 + $0x4] sm:$0xf]  ;;  %v4255_v48 = vor.u32 %v5009_v36, %v4254_v37  ;;  %v4430_v37 = vld [vmem:[#allocation4 + $0x168] sm:$0xf]  ;;  %v5053_v36 = vld [vmem:[#allocation4 + $0x174] sm:$0xf0] }
 0x162   :  { %2785 = vmatpush.bf16.msra.mxu2 %v4367_v22  ;;  %2837 = vmatpush.bf16.msrb.mxu1 %v4371_v52  ;;  %v2567_v22 = vpack.c.b16 %v2467_v12, %v2467_v12  ;;  %v4431_v39 = vor.u32 %v5053_v36, %v4430_v37 }
 0x163   :  { %2815 = vmatpush.bf16.msra.mxu0 %v4559_v55  ;;  %v4299_v55 = vor.u32 %v5018_v53, %v4296_v54 }
 0x164   :  { %v2679_v13 = vsel %vm2668_vm0, %v2567_v22, 0 }
 0x165   :  { %2737 = vmatpush.bf16.msrb.mxu3 %v4299_v55 }
 0x166   :  { %2786 = vmatpush.bf16.msra.mxu2 %v4351_v28  ;;  %v357_v28 = vperm.slane %v5389_v4, 3  ;;  %v5007_v4 = vld [vmem:[#allocation4 + $0xc] sm:$0xf] }
 0x167   :  { %2816 = vmatpush.bf16.msra.mxu0 %v4543_v62  ;;  %v4355_v62 = vor.u32 %v5031_v59, %v4352_v60  ;;  %v4259_v51 = vor.u32 %v5007_v4, %v4256_v50  ;;  %v5045_v4 = vld [vmem:[#allocation4 + $0x134] sm:$0xf0]  ;;  %v5043_v50 = vld [vmem:[#allocation4 + $0x12c] sm:$0xf] }
 0x169   :  { %2838 = vmatpush.bf16.msrb.mxu1 %v4355_v62  ;;  %2738 = vmatpush.bf16.msrb.mxu3 %v4283_v1  ;;  %v4496_v1 = vld [vmem:[#allocation4 + $0x1f8] sm:$0xf0] }
 0x16a   :  { %2787 = vmatpush.bf16.msra.mxu2 %v4335_v44  ;;  %v4291_v44 = vor.u32 %v5015_v43, %v4288_v38  ;;  %v4499_v6 = vor.u32 %v5067_v0, %v4496_v1  ;;  %v4608_v0 = vld [vmem:[#allocation4 + $0x2d8] sm:$0xf0] }
 0x16b   :  { %2817 = vmatpush.bf16.msra.mxu0 %v4527_v17  ;;  %v4270_v17 = vld [vmem:[#allocation4 + $0x28] sm:$0xf] }
 0x16c   :  { %v4271_v19 = vor.u32 %v5013_v18, %v4270_v17  ;;  %v4462_v17 = vld [vmem:[#allocation4 + $0x1a8] sm:$0xf]  ;;  %v5061_v18 = vld [vmem:[#allocation4 + $0x1b4] sm:$0xf0] }
 0x16d   :  { %2839 = vmatpush.bf16.msrb.mxu1 %v4339_v25  ;;  %2739 = vmatpush.bf16.msrb.mxu3 %v4267_v16  ;;  %v5065_v25 = vld [vmem:[#allocation4 + $0x1d4] sm:$0xf0]  ;;  %v4483_v16 = vor.u32 %v5063_v10, %v4480_v11  ;;  %v4463_v21 = vor.u32 %v5061_v18, %v4462_v17  ;;  %v4560_v10 = vld [vmem:[#allocation4 + $0x278] sm:$0xf0]  ;;  %v5075_v18 = vld [vmem:[#allocation4 + $0x22c] sm:$0xf] }
 0x16e   :  { %2788 = vmatpush.bf16.msra.mxu2 %v4319_v49 }
 0x16f   :  { %2818 = vmatpush.bf16.msra.mxu0 %v4511_v31  ;;  %v1963_v61 = vpop.f32.mrf.mxu0  ;;  %v1976_v8 = vpop.f32.mrf.mxu1  ;;  %v4251_v31 = vor.u32 %v5006_v29, %v4248_v30  ;;  %v5410_v29 = vld [vmem:[%s5522_s4] sm:$0xf] }
 0x170   :  { %v1964_v42 = vadd.f32 %v1963_v61, %v357_v28  ;;  %v5051_v28 = vld [vmem:[#allocation4 + $0x16c] sm:$0xf] }
 0x171   :  { %2840 = vmatpush.bf16.msrb.mxu1 %v4323_v24  ;;  %2740 = vmatpush.bf16.msrb.mxu3 %v4251_v31  ;;  %v5057_v24 = vld [vmem:[#allocation4 + $0x194] sm:$0xf0] }
 0x172   :  { %2819 = vmatmul.bf16.vlgmr.msra.gmra.mxu0 %v5395_v26  ;;  %2789 = vmatpush.bf16.msra.mxu2 %v4303_v58  ;;  %v1977_v45 = vadd.f32 %v1976_v8, %v1964_v42  ;;  %v4494_v8 = vld [vmem:[#allocation4 + $0x1e8] sm:$0xf]  ;;  %v5049_v42 = vld [vmem:[#allocation4 + $0x154] sm:$0xf0] }
 0x173   :  { %2883 = vmatpush.bf16.msrb.mxu0 %v2679_v13  ;;  %v4495_v3 = vor.u32 %v5069_v63, %v4494_v8  ;;  %v4448_v13 = vld [vmem:[#allocation4 + $0x198] sm:$0xf0]  ;;  %v5095_v63 = vld [vmem:[#allocation4 + $0x2cc] sm:$0xf] }
 0x174   :  { %v4611_v1 = vor.u32 %v5095_v63, %v4608_v0  ;;  %v5118_v0 = vld [vmem:[%s5523_s5 + $0x80] sm:$0xff] }
 0x175   :  { %2841 = vmatpush.bf16.msrb.mxu1 %v4307_v34  ;;  %v4435_v34 = vor.u32 %v5051_v28, %v4432_v7 }
 0x176   :  { %2790 = vmatpush.bf16.msra.mxu2 %v4287_v9 }
 0x177   :  { %v2002_v14 = vpop.f32.mrf.mxu3  ;;  %v1965_v23 = vpop.f32.mrf.mxu0 }
 0x178   :  { %v1989_v5 = vpop.f32.mrf.mxu2  ;;  %v1978_v27 = vpop.f32.mrf.mxu1  ;;  %v4446_v23 = vld [vmem:[#allocation4 + $0x188] sm:$0xf] }
 0x179   :  { %2842 = vmatpush.bf16.msrb.mxu1 %v4291_v44  ;;  %v1990_v49 = vadd.f32 %v1989_v5, %v1977_v45  ;;  %v5055_v27 = vld [vmem:[#allocation4 + $0x18c] sm:$0xf]  ;;  %v4447_v30 = vor.u32 %v5057_v24, %v4446_v23  ;;  %v4416_v45 = vld [vmem:[#allocation4 + $0x158] sm:$0xf0] }
 0x17a   :  { %2791 = vmatpush.bf16.msra.mxu2 %v4271_v19  ;;  %v5059_v19 = vld [vmem:[#allocation4 + $0x1ac] sm:$0xf]  ;;  %v4451_v31 = vor.u32 %v5055_v27, %v4448_v13  ;;  %v4512_v24 = vld [vmem:[#allocation4 + $0x218] sm:$0xf0] }
 0x17b   :  { %v2003_v52 = vadd.f32 %v2002_v14, %v1990_v49  ;;  %v4479_v14 = vor.u32 %v5065_v25, %v4478_v15  ;;  %v4467_v22 = vor.u32 %v5059_v19, %v4464_v20  ;;  %v5047_v44 = vld [vmem:[#allocation4 + $0x14c] sm:$0xf]  ;;  %v4398_v49 = vld [vmem:[#allocation4 + $0x128] sm:$0xf]  ;;  %v4576_v15 = vld [vmem:[#allocation4 + $0x298] sm:$0xf0] }
 0x17c   :  { %v4528_v19 = vld [vmem:[#allocation4 + $0x238] sm:$0xf0]  ;;  %v5071_v23 = vld [vmem:[#allocation4 + $0x20c] sm:$0xf] }
 0x17d   :  { %2843 = vmatpush.bf16.msrb.mxu1 %v4275_v47  ;;  %v4419_v47 = vor.u32 %v5047_v44, %v4416_v45  ;;  %v4531_v20 = vor.u32 %v5075_v18, %v4528_v19  ;;  %v4515_v27 = vor.u32 %v5071_v23, %v4512_v24  ;;  %v5107_v13 = vld [vmem:[%s5523_s5 + $0x28] sm:$0xff]  ;;  %v5125_v44 = vld [vmem:[%s5523_s5 + $0xb8] sm:$0xff]  ;;  %v2168_v19 = vperm.slane %v5410_v29, 2 }
 0x17e   :  { %2792 = vmatpush.bf16.msra.mxu2 %v4255_v48  ;;  %v2166_v48 = vperm.slane %v5410_v29, 0  ;;  %v5113_v45 = vld [vmem:[%s5523_s5 + $0x58] sm:$0xff] }
 0x17f   :  { %v2004_v41 = vpop.f32.mrf.mxu3 }
 0x180   :  { %v1991_v40 = vpop.f32.mrf.mxu2  ;;  %v4414_v41 = vld [vmem:[#allocation4 + $0x148] sm:$0xf] }
 0x181   :  { %2844 = vmatpush.bf16.msrb.mxu1 %v4259_v51  ;;  %v4415_v33 = vor.u32 %v5049_v42, %v4414_v41  ;;  %v4400_v51 = vld [vmem:[#allocation4 + $0x138] sm:$0xf0]  ;;  %v5116_v41 = vld [vmem:[%s5523_s5 + $0x70] sm:$0xff]  ;;  %v5102_v42 = vld [vmem:[%s5523_s5] sm:$0xff] }
 0x18f   :  { %v2015_v53 = vpop.f32.mrf.mxu0  ;;  %v2028_v54 = vpop.f32.mrf.mxu1 }
 0x190   :  { %v2016_v55 = vadd.f32 %v2015_v53, %v2003_v52  ;;  %v4399_v52 = vor.u32 %v5045_v4, %v4398_v49  ;;  %v5123_v49 = vld [vmem:[%s5523_s5 + $0xa8] sm:$0xff] }
 0x191   :  { %v5111_v4 = vld [vmem:[%s5523_s5 + $0x48] sm:$0xff] }
 0x192   :  { %v2029_v56 = vadd.f32 %v2028_v54, %v2016_v55  ;;  %v4403_v54 = vor.u32 %v5043_v50, %v4400_v51  ;;  %v4382_v55 = vld [vmem:[#allocation4 + $0x108] sm:$0xf]  ;;  %v5122_v50 = vld [vmem:[%s5523_s5 + $0xa0] sm:$0xff] }
 0x193   :  { %v5110_v51 = vld [vmem:[%s5523_s5 + $0x40] sm:$0xff] }
 0x197   :  { %v2041_v57 = vpop.f32.mrf.mxu2  ;;  %v2054_v59 = vpop.f32.mrf.mxu3 }
 0x198   :  { %v2042_v58 = vadd.f32 %v2041_v57, %v2029_v56  ;;  %v2017_v60 = vpop.f32.mrf.mxu0  ;;  %v2030_v61 = vpop.f32.mrf.mxu1  ;;  %v5041_v56 = vld [vmem:[#allocation4 + $0x114] sm:$0xf0]  ;;  %v5039_v57 = vld [vmem:[#allocation4 + $0x10c] sm:$0xf] }
 0x199   :  { %v5099_v60 = vld [vmem:[#allocation4 + $0x2ec] sm:$0xf]  ;;  %v4624_v61 = vld [vmem:[#allocation4 + $0x2f8] sm:$0xf0] }
 0x19a   :  { %v2055_v62 = vadd.f32 %v2054_v59, %v2042_v58  ;;  %v4384_v59 = vld [vmem:[#allocation4 + $0x118] sm:$0xf0]  ;;  %v4627_v8 = vor.u32 %v5099_v60, %v4624_v61 }
 0x19c   :  { %v2061_v2 = vmax.f32 %v2055_v62, 0.0  ;;  %v4387_v62 = vor.u32 %v5039_v57, %v4384_v59 }
 0x19e   :  { %v2065_v9 = vpack.c.bf16 %v2061_v2, %v2061_v2  ;;  %v5091_v2 = vld [vmem:[#allocation4 + $0x2ac] sm:$0xf] }
 0x19f   :  { %v2043_v5 = vpop.f32.mrf.mxu2  ;;  %v2056_v12 = vpop.f32.mrf.mxu3 }
 0x1a0   :  { %4628 = vmatmul.msk.bf16.vlgmr.msra.gmra.mxu3 %vm2664_vm1, %v2065_v9  ;;  %4629 = vmatmul.msk.bf16.vlgmr.msrb.gmra.mxu2 %vm2664_vm1, %v2065_v9  ;;  %v5083_v5 = vld [vmem:[#allocation4 + $0x26c] sm:$0xf] }
 0x1a1   :  { %2798 = vmatpush.bf16.msra.mxu3 %v4495_v3  ;;  %4630 = vmatmul.msk.bf16.vlgmr.msra.gmra.mxu1 %vm2664_vm1, %v2065_v9  ;;  %v4592_v3 = vld [vmem:[#allocation4 + $0x2b8] sm:$0xf0]  ;;  %v4563_v11 = vor.u32 %v5083_v5, %v4560_v10 }
 0x1a2   :  { %4631 = vmatmul.msk.bf16.vlgmr.msrb.gmra.mxu0 %vm2664_vm1, %v2065_v9  ;;  %2850 = vmatpush.bf16.msrb.mxu2 %v4499_v6  ;;  %v4595_v9 = vor.u32 %v5091_v2, %v4592_v3  ;;  %v5087_v6 = vld [vmem:[#allocation4 + $0x28c] sm:$0xf]  ;;  %v5126_v2 = vld [vmem:[%s5523_s5 + $0xc0] sm:$0xff]  ;;  %v2167_v3 = vperm.slane %v5410_v29, 1 }
 0x1a3   :  { %v4579_v25 = vor.u32 %v5087_v6, %v4576_v15 }
 0x1a5   :  { %2799 = vmatpush.bf16.msra.mxu3 %v4479_v14  ;;  %v5079_v14 = vld [vmem:[#allocation4 + $0x24c] sm:$0xf] }
 0x1a6   :  { %2851 = vmatpush.bf16.msrb.mxu2 %v4483_v16  ;;  %v4544_v16 = vld [vmem:[#allocation4 + $0x258] sm:$0xf0] }
 0x1a7   :  { %v4547_v17 = vor.u32 %v5079_v14, %v4544_v16 }
 0x1a9   :  { %2800 = vmatpush.bf16.msra.mxu3 %v4463_v21  ;;  %v5108_v21 = vld [vmem:[%s5523_s5 + $0x30] sm:$0xff] }
 0x1aa   :  { %2852 = vmatpush.bf16.msrb.mxu2 %v4467_v22 }
 0x1ad   :  { %2801 = vmatpush.bf16.msra.mxu3 %v4447_v30  ;;  %v5106_v30 = vld [vmem:[%s5523_s5 + $0x20] sm:$0xff] }
 0x1ae   :  { %2853 = vmatpush.bf16.msrb.mxu2 %v4451_v31  ;;  %v5105_v31 = vld [vmem:[%s5523_s5 + $0x18] sm:$0xff] }
 0x1af   :  { %v2690_v40 = vpop.f32.mrf.mxu0  ;;  %v2703_v38 = vpop.f32.mrf.mxu1 }
 0x1b0   :  { %v2691_v43 = vadd.f32 %v2690_v40, %v2166_v48  ;;  %2741 = vmatmul.bf16.vlgmr.msrb.gmra.mxu3 %v5382_v35  ;;  %2793 = vmatmul.bf16.vlgmr.msra.gmra.mxu2 %v5382_v35  ;;  %v5104_v40 = vld [vmem:[%s5523_s5 + $0x10] sm:$0xff] }
 0x1b1   :  { %2802 = vmatpush.bf16.msra.mxu3 %v4431_v39  ;;  %2845 = vmatmul.bf16.vlgmr.msrb.gmra.mxu1 %v5382_v35  ;;  %v4383_v35 = vor.u32 %v5041_v56, %v4382_v55 }
 0x1b2   :  { %v5415_v46 = vadd.f32 %v2703_v38, %v2691_v43  ;;  %2854 = vmatpush.bf16.msrb.mxu2 %v4435_v34  ;;  %v5103_v34 = vld [vmem:[%s5523_s5 + $0x8] sm:$0xff]  ;;  %v5114_v38 = vld [vmem:[%s5523_s5 + $0x60] sm:$0xff] }
 0x1b3   :  { %v5115_v43 = vld [vmem:[%s5523_s5 + $0x68] sm:$0xff] }
 0x1b5   :  { %2803 = vmatpush.bf16.msra.mxu3 %v4415_v33  ;;  %v5124_v33 = vld [vmem:[%s5523_s5 + $0xb0] sm:$0xff] }
 0x1b6   :  { %2855 = vmatpush.bf16.msrb.mxu2 %v4419_v47  ;;  %v5112_v47 = vld [vmem:[%s5523_s5 + $0x50] sm:$0xff] }
 0x1b7   :  { %v2692_v53 = vpop.f32.mrf.mxu0  ;;  %v2705_v58 = vpop.f32.mrf.mxu1 }
 0x1b8   :  { %v5121_v53 = vld [vmem:[%s5523_s5 + $0x98] sm:$0xff]  ;;  %v5120_v58 = vld [vmem:[%s5523_s5 + $0x90] sm:$0xff] }
 0x1b9   :  { %2804 = vmatpush.bf16.msra.mxu3 %v4399_v52 }
 0x1ba   :  { %2856 = vmatpush.bf16.msrb.mxu2 %v4403_v54 }
 0x1bd   :  { %2805 = vmatpush.bf16.msra.mxu3 %v4383_v35 }
 0x1be   :  { %2857 = vmatpush.bf16.msrb.mxu2 %v4387_v62  ;;  %v5119_v62 = vld [vmem:[%s5523_s5 + $0x88] sm:$0xff] }
 0x1c0   :  { %2806 = vmatmul.bf16.vlgmr.msra.gmra.mxu3 %v5380_v32 }
 0x1c1   :  { %2863 = vmatpush.bf16.msrb.mxu3 %v4627_v8  ;;  %2858 = vmatmul.bf16.vlgmr.msrb.gmra.mxu2 %v5380_v32  ;;  %v5109_v32 = vld [vmem:[%s5523_s5 + $0x38] sm:$0xff] }
 0x1c2   :  { %3105 = vmatpush.bf16.msra.mxu0 %v5109_v32  ;;  %3131 = vmatpush.bf16.msra.mxu2 %v5125_v44  ;;  %v5128_v44 = vld [vmem:[#allocation6 + $0x8] sm:$0xff] }
 0x1c5   :  { %2864 = vmatpush.bf16.msrb.mxu3 %v4611_v1 }
 0x1c6   :  { %3106 = vmatpush.bf16.msra.mxu0 %v5108_v21  ;;  %3132 = vmatpush.bf16.msra.mxu2 %v5124_v33 }
 0x1c9   :  { %2865 = vmatpush.bf16.msrb.mxu3 %v4595_v9 }
 0x1ca   :  { %3107 = vmatpush.bf16.msra.mxu0 %v5107_v13  ;;  %3133 = vmatpush.bf16.msra.mxu2 %v5123_v49  ;;  %v5138_v49 = vld [vmem:[%s5524_s6] ss:$0 sm:$0xff] }
 0x1cd   :  { %2866 = vmatpush.bf16.msrb.mxu3 %v4579_v25 }
 0x1ce   :  { %3108 = vmatpush.bf16.msra.mxu0 %v5106_v30  ;;  %3134 = vmatpush.bf16.msra.mxu2 %v5122_v50 }
 0x1cf   :  { %v5420_v12 = vpop.f32.mrf.mxu0 }
 0x1d1   :  { %2867 = vmatpush.bf16.msrb.mxu3 %v4563_v11 }
 0x1d2   :  { %3109 = vmatpush.bf16.msra.mxu0 %v5105_v31  ;;  %3135 = vmatpush.bf16.msra.mxu2 %v5121_v53  ;;  %v2169_v31 = vperm.slane %v5410_v29, 3 }
 0x1d5   :  { %2868 = vmatpush.bf16.msrb.mxu3 %v4547_v17 }
 0x1d6   :  { %3110 = vmatpush.bf16.msra.mxu0 %v5104_v40  ;;  %3136 = vmatpush.bf16.msra.mxu2 %v5120_v58 }
 0x1d7   :  { %v2757_v22 = vpop.f32.mrf.mxu0 }
 0x1d9   :  { %2869 = vmatpush.bf16.msrb.mxu3 %v4531_v20 }
 0x1da   :  { %3111 = vmatpush.bf16.msra.mxu0 %v5103_v34  ;;  %3137 = vmatpush.bf16.msra.mxu2 %v5119_v62 }
 0x1dd   :  { %2870 = vmatpush.bf16.msrb.mxu3 %v4515_v27 }
 0x1de   :  { %v5438_v37 = vpop.f32.mrf.mxu1  ;;  %3112 = vmatpush.bf16.msra.mxu0 %v5102_v42  ;;  %3138 = vmatpush.bf16.msra.mxu2 %v5118_v0  ;;  %v5130_v42 = vld [vmem:[#allocation6 + $0x18] sm:$0xff] }
 0x1e0   :  { %2871 = vmatmul.bf16.vlgmr.msrb.gmra.mxu3 %v5395_v26  ;;  %v5117_v26 = vld [vmem:[%s5523_s5 + $0x78] sm:$0xff] }
 0x1e1   :  { %3118 = vmatpush.bf16.msra.mxu1 %v5117_v26  ;;  %3151 = vmatpush.bf16.msra.mxu3 %v5126_v2 }
 0x1e4   :  { %v2716_v36 = vpop.f32.mrf.mxu2 }
 0x1e5   :  { %3119 = vmatpush.bf16.msra.mxu1 %v5116_v41  ;;  %v2717_v55 = vadd.f32 %v2716_v36, %v5415_v46  ;;  %3203 = vmatpush.bf16.msrb.mxu3 %v5130_v42 }
 0x1e6   :  { %v2770_v28 = vpop.f32.mrf.mxu1 }
 0x1e9   :  { %3120 = vmatpush.bf16.msra.mxu1 %v5115_v43  ;;  %v5129_v43 = vld [vmem:[#allocation6 + $0x10] sm:$0xff] }
 0x1ea   :  { %3204 = vmatpush.bf16.msrb.mxu3 %v5129_v43 }
 0x1ec   :  { %v2718_v7 = vpop.f32.mrf.mxu2 }
 0x1ed   :  { %3121 = vmatpush.bf16.msra.mxu1 %v5114_v38 }
 0x1ee   :  { %3205 = vmatpush.bf16.msrb.mxu3 %v5128_v44 }
 0x1ef   :  { %v5440_v48 = vpop.f32.mrf.mxu0 }
 0x1f1   :  { %3122 = vmatpush.bf16.msra.mxu1 %v5113_v45  ;;  %v5127_v45 = vld [vmem:[#allocation6] sm:$0xff] }
 0x1f2   :  { %3206 = vmatpush.bf16.msrb.mxu3 %v5127_v45 }
 0x1f5   :  { %3123 = vmatpush.bf16.msra.mxu1 %v5112_v47 }
 0x1f7   :  { %v2822_v39 = vpop.f32.mrf.mxu0 }
 0x1f9   :  { %3124 = vmatpush.bf16.msra.mxu1 %v5111_v4 }
 0x1fd   :  { %3125 = vmatpush.bf16.msra.mxu1 %v5110_v51 }
 0x21e   :  { %v2833_v52 = vpop.f32.mrf.mxu1 }
 0x21f   :  { %v2885_v54 = vpop.f32.mrf.mxu0 }
 0x223   :  { %v2729_v56 = vpop.f32.mrf.mxu3  ;;  %v2781_v57 = vpop.f32.mrf.mxu2 }
 0x224   :  { %v2730_v59 = vadd.f32 %v2729_v56, %v2717_v55 }
 0x226   :  { %v2889_v60 = vmax.f32 %v2730_v59, 0.0  ;;  %v2835_v61 = vpop.f32.mrf.mxu1 }
 0x227   :  { %v2887_v35 = vpop.f32.mrf.mxu0 }
 0x228   :  { %v2893_v8 = vpack.c.bf16 %v2889_v60, %v2889_v60 }
 0x22a   :  { %3113 = vmatmul.bf16.vlgmr.msra.gmra.mxu0 %v2893_v8 }
 0x22b   :  { %v2731_v63 = vpop.f32.mrf.mxu3  ;;  %v2783_v46 = vpop.f32.mrf.mxu2 }
 0x22e   :  { %v2846_v1 = vpop.f32.mrf.mxu1 }
 0x233   :  { %v2742_v9 = vpop.f32.mrf.mxu3  ;;  %v2794_v6 = vpop.f32.mrf.mxu2 }
 0x234   :  { %v2743_v15 = vadd.f32 %v2742_v9, %v2167_v3  ;;  %v2795_v32 = vadd.f32 %v2794_v6, %v2168_v19 }
 0x236   :  { %v2756_v25 = vadd.f32 %v5420_v12, %v2743_v15  ;;  %v2848_v5 = vpop.f32.mrf.mxu1 }
 0x238   :  { %v2769_v10 = vadd.f32 %v5438_v37, %v2756_v25  ;;  %v2847_v37 = vadd.f32 %v2846_v1, %v2169_v31 }
 0x23a   :  { %v2782_v11 = vadd.f32 %v2781_v57, %v2769_v10  ;;  %v5139_v57 = vld [vmem:[%s5526_s8] ss:$0 sm:$0xff] }
 0x23b   :  { %v2744_v14 = vpop.f32.mrf.mxu3  ;;  %v2796_v16 = vpop.f32.mrf.mxu2 }
 0x23c   :  { %v2890_v17 = vmax.f32 %v2782_v11, 0.0 }
 0x23e   :  { %v2894_v18 = vpack.c.bf16 %v2890_v17, %v2890_v17 }
 0x240   :  { %3126 = vmatmul.bf16.vlgmr.msra.gmra.mxu1 %v2894_v18 }
 0x243   :  { %v2807_v20 = vpop.f32.mrf.mxu3 }
 0x244   :  { %v2808_v21 = vadd.f32 %v2807_v20, %v2795_v32  ;;  %v2859_v22 = vpop.f32.mrf.mxu2 }
 0x245   :  { %v2860_v36 = vadd.f32 %v2859_v22, %v2847_v37 }
 0x246   :  { %v2821_v23 = vadd.f32 %v5440_v48, %v2808_v21 }
 0x248   :  { %v2834_v24 = vadd.f32 %v2833_v52, %v2821_v23 }
 0x24a   :  { %v2891_v27 = vmax.f32 %v2834_v24, 0.0 }
 0x24b   :  { %v2809_v12 = vpop.f32.mrf.mxu3 }
 0x24c   :  { %v2895_v13 = vpack.c.bf16 %v2891_v27, %v2891_v27  ;;  %v2861_v30 = vpop.f32.mrf.mxu2 }
 0x24e   :  { %3139 = vmatmul.bf16.vlgmr.msra.gmra.mxu2 %v2895_v13 }
 0x263   :  { %v2872_v28 = vpop.f32.mrf.mxu3 }
 0x264   :  { %v2873_v7 = vadd.f32 %v2872_v28, %v2860_v36 }
 0x266   :  { %v2886_v39 = vadd.f32 %v2885_v54, %v2873_v7 }
 0x268   :  { %v2892_v40 = vmax.f32 %v2886_v39, 0.0 }
 0x26a   :  { %v2896_v26 = vpack.c.bf16 %v2892_v40, %v2892_v40 }
 0x26b   :  { %v2874_v34 = vpop.f32.mrf.mxu3 }
 0x26c   :  { %4732 = vmatmul.msk.bf16.vlgmr.msra.gmra.mxu3 %vm3101_vm2, %v2896_v26 }
 0x2a7   :  { %v3114_v41 = vpop.f32.mrf.mxu0 }
 0x2a8   :  { %v3115_v4 = vadd.f32 %v5138_v49, %v3114_v41 }
 0x2af   :  { %v3116_v48 = vpop.f32.mrf.mxu0 }
 0x2bd   :  { %v3127_v38 = vpop.f32.mrf.mxu1 }
 0x2be   :  { %v3128_v50 = vadd.f32 %v3127_v38, %v3115_v4 }
 0x2c5   :  { %v3129_v29 = vpop.f32.mrf.mxu1 }
 0x2d1   :  { %v3140_v33 = vpop.f32.mrf.mxu2 }
 0x2d2   :  { %v3141_v51 = vadd.f32 %v3140_v33, %v3128_v50 }
 0x2d9   :  { %v3142_v47 = vpop.f32.mrf.mxu2 }
 0x2ef   :  { %v3153_v52 = vpop.f32.mrf.mxu3 }
 0x2f0   :  { %v3154_v53 = vadd.f32 %v3153_v52, %v3141_v51 }
 0x2f2   :  { %v3157_v54 = vmax.f32 %v3154_v53, 0.0 }
 0x2f4   :  { %v3158_v55 = vpack.c.bf16 %v3157_v54, %v3157_v54 }
 0x2f6   :  { %4749 = vmatmul.msk.bf16.vlgmr.msrb.gmra.mxu3 %vm3195_vm3, %v3158_v55 }
 0x2f7   :  { %v3155_v56 = vpop.f32.mrf.mxu3 }
 0x379   :  { %v3208_v58 = vpop.f32.mrf.mxu3 }
 0x37a   :  { %v3209_v59 = vadd.f32 %v5139_v57, %v3208_v58 }
 0x37c   :  { %3213 = vst.msk [vmem:[%s5527_s9] sm:$0xff] %vm3212_vm4, %v3209_v59 }
 0x381   :  { %v3210_v60 = vpop.f32.mrf.mxu3 }
 0x382   :  { %3218 = vsyncpa [#allocation3], 1 }
 0x383   :  { %3219 = vsyncpa [#allocation5], 1 }

</bundles_post_ra>
